<compile_context>
chip_gen: v6e
topology: v6e:2x2x1
jax: 0.10.0
libtpu: 0.0.40
codegen_flags: <defaults>
</compile_context>

<pallas_src>
import functools

import jax
import jax.numpy as jnp
from jax.experimental import pallas as pl
from jax.experimental.pallas import tpu as pltpu


def _layernorm(x, gamma, beta, eps=1e-5):
    # x: (..., dim) fp32 ; gamma/beta: (1, dim) fp32
    mu = jnp.mean(x, axis=-1, keepdims=True)
    var = jnp.mean(jnp.square(x - mu), axis=-1, keepdims=True)
    return (x - mu) * jax.lax.rsqrt(var + eps) * gamma + beta


def perceiver_attention_kernel(
    x_ref, lat_ref,
    wq_ref, wk_ref, wv_ref, wout_ref,   # head-major weights
    ln_ref,                             # (6, dim): gx, bx, gl, bl, go, bo
    o_ref,
    *, heads, scale, matmul_dtype,
):
    B, n_x, dim = x_ref.shape
    _, n_l, _ = lat_ref.shape
    g = heads * B
    md = matmul_dtype
    f32 = jnp.float32

    # ---- LayerNorms (fp32 vector math) -------------------------------------
    ln = ln_ref[...].astype(f32)                      # (6, dim)
    x = x_ref[...].astype(f32)                        # (B, n_x, dim)
    lat = lat_ref[...].astype(f32)                    # (B, n_l, dim)
    xn = _layernorm(x, ln[0:1], ln[1:2])              # self.norm(x)
    latn = _layernorm(lat, ln[2:3], ln[3:4])          # self.norm_latents(latents)

    # ---- Broadcast to the g = heads*B batch axis ----------------------------
    # Only leading-dim broadcasts / leading-dim reshapes (last two dims are
    # never touched), so no lane/sublane shuffles are generated.
    def bcast_act(a, n):
        a = a.astype(md)
        return jnp.broadcast_to(a[None], (heads, B, n, dim)).reshape(g, n, dim)

    def bcast_w(w):                                    # (heads, i, o) -> (g, i, o)
        w = w.astype(md)
        return jnp.broadcast_to(w[:, None], (heads, B) + w.shape[1:]).reshape(
            (g,) + w.shape[1:])

    xn_g = bcast_act(xn, n_x)                          # (g, n_x, dim)
    latn_g = bcast_act(latn, n_l)                      # (g, n_l, dim)
    wq = bcast_w(wq_ref[...])                          # (g, dim, dh)
    wk = bcast_w(wk_ref[...])                          # (g, dim, dh)
    wv = bcast_w(wv_ref[...])                          # (g, dim, dh)
    wo = bcast_w(wout_ref[...])                        # (g, dh, dim)

    mm = functools.partial(jnp.einsum, preferred_element_type=jnp.float32)

    # ---- Projections (head-major, batched over g) ---------------------------
    q = mm('gnd,gdf->gnf', latn_g, wq)                 # (g, n_l, dh) fp32
    q = (q * scale).astype(md)
    k_x = mm('gnd,gdf->gnf', xn_g, wk).astype(md)      # (g, n_x, dh)
    k_l = mm('gnd,gdf->gnf', latn_g, wk).astype(md)    # (g, n_l, dh)
    v_x = mm('gnd,gdf->gnf', xn_g, wv).astype(md)
    v_l = mm('gnd,gdf->gnf', latn_g, wv).astype(md)

    # ---- Attention: joint softmax over both key sources, no concatenation ---
    sim_x = mm('gqf,gkf->gqk', q, k_x)                 # (g, n_l, n_x) fp32
    sim_l = mm('gqf,gkf->gqk', q, k_l)                 # (g, n_l, n_l) fp32
    # TODO(synk): optional boolean `mask` (masked_fill before softmax) and the
    # cosine_sim_attn=True branch are not wired; defaults match the PyTorch forward.

    m = jnp.maximum(jnp.max(sim_x, axis=-1, keepdims=True),
                    jnp.max(sim_l, axis=-1, keepdims=True))
    p_x = jnp.exp(sim_x - m)
    p_l = jnp.exp(sim_l - m)
    denom = (jnp.sum(p_x, axis=-1, keepdims=True)
             + jnp.sum(p_l, axis=-1, keepdims=True))
    inv = pl.reciprocal(denom, approx=True)            # (g, n_l, 1) fp32, EUP

    out = (mm('gqk,gkf->gqf', p_x.astype(md), v_x)
           + mm('gqk,gkf->gqf', p_l.astype(md), v_l))  # (g, n_l, dh) fp32
    out = out * inv                                    # softmax normalization

    # ---- Fused head-merge + output projection -------------------------------
    proj = mm('gqf,gfd->gqd', out.astype(md), wo)      # (g, n_l, dim) fp32
    proj = proj.reshape(heads, B, n_l, dim).sum(axis=0)  # (B, n_l, dim)

    o = _layernorm(proj, ln[4:5], ln[5:6])             # to_out LayerNorm
    o_ref[...] = o.astype(o_ref.dtype)


def perceiver_attention(x, latents, params, *, heads, dim_head,
                        matmul_dtype=jnp.float32, batch_block=None):
    b, n_x, dim = x.shape
    _, n_l, _ = latents.shape
    inner = heads * dim_head
    n_kv = n_x + n_l
    scale = dim_head ** -0.5

    if batch_block is None:
        batch_block = next(c for c in (8, 4, 2, 1) if b % c == 0)
    assert b % batch_block == 0, "batch_block must divide batch"
    grid = (b // batch_block,)

    wdt = matmul_dtype
    # Head-major weight layout built once in the wrapper (static layout work).
    wq_h = params["wq"].reshape(dim, heads, dim_head).transpose(1, 0, 2).astype(wdt)
    wk_h = params["wkv"][:, :inner].reshape(dim, heads, dim_head).transpose(1, 0, 2).astype(wdt)
    wv_h = params["wkv"][:, inner:].reshape(dim, heads, dim_head).transpose(1, 0, 2).astype(wdt)
    wout_h = params["wout"].reshape(heads, dim_head, dim).astype(wdt)
    ln_packed = jnp.stack(
        [params["gx"], params["bx"], params["gl"], params["bl"],
         params["go"], params["bo"]], axis=0).astype(jnp.float32)        # (6, dim)

    kernel = functools.partial(
        perceiver_attention_kernel,
        heads=heads, scale=scale, matmul_dtype=matmul_dtype)

    whole = lambda shp: pl.BlockSpec(shp, lambda i: (0,) * len(shp))

    itemsize = jnp.dtype(x.dtype).itemsize
    w_itemsize = jnp.dtype(wdt).itemsize
    flops = 2 * b * (n_l * dim * inner                  # q projection
                     + n_kv * dim * 2 * inner           # k, v projections
                     + 2 * heads * n_l * n_kv * dim_head  # q·k^T and p·v
                     + n_l * inner * dim)               # output projection
    bytes_accessed = (x.size * itemsize + latents.size * itemsize
                      + (wq_h.size + wk_h.size + wv_h.size + wout_h.size) * w_itemsize
                      + ln_packed.size * 4
                      + b * n_l * dim * itemsize)
    cost = pl.CostEstimate(flops=flops,
                           transcendentals=b * heads * n_l * n_kv,
                           bytes_accessed=bytes_accessed)

    return pl.pallas_call(
        kernel,
        out_shape=jax.ShapeDtypeStruct((b, n_l, dim), x.dtype),
        grid=grid,
        in_specs=[
            pl.BlockSpec((batch_block, n_x, dim), lambda i: (i, 0, 0)),   # x
            pl.BlockSpec((batch_block, n_l, dim), lambda i: (i, 0, 0)),   # latents
            whole((heads, dim, dim_head)),                                # W_q (head-major)
            whole((heads, dim, dim_head)),                                # W_k
            whole((heads, dim, dim_head)),                                # W_v
            whole((heads, dim_head, dim)),                                # W_out
            whole((6, dim)),                                              # packed LN params
        ],
        out_specs=pl.BlockSpec((batch_block, n_l, dim), lambda i: (i, 0, 0)),
        compiler_params=pltpu.CompilerParams(dimension_semantics=("parallel",)),
        cost_estimate=cost,
    )(x, latents, wq_h, wk_h, wv_h, wout_h, ln_packed)


def reference_jax(x, latents, params, *, heads, dim_head):
    """Pure-JAX reference mirroring the PyTorch forward (mask=None, cosine_sim_attn=False)."""
    scale = dim_head ** -0.5

    def ln(t, g, b):
        mu = jnp.mean(t, axis=-1, keepdims=True)
        var = jnp.mean((t - mu) ** 2, axis=-1, keepdims=True)
        return (t - mu) / jnp.sqrt(var + 1e-5) * g + b

    xn = ln(x, params["gx"], params["bx"])
    latn = ln(latents, params["gl"], params["bl"])
    q = latn @ params["wq"]
    kv_in = jnp.concatenate([xn, latn], axis=-2)
    kv = kv_in @ params["wkv"]
    k, v = jnp.split(kv, 2, axis=-1)

    def to_heads(t):
        b_, n_, _ = t.shape
        return t.reshape(b_, n_, heads, dim_head).transpose(0, 2, 1, 3)

    q, k, v = map(to_heads, (q, k, v))
    q = q * scale
    sim = jnp.einsum("bhid,bhjd->bhij", q, k)
    attn = jax.nn.softmax(sim.astype(jnp.float32), axis=-1).astype(sim.dtype)
    out = jnp.einsum("bhij,bhjd->bhid", attn, v)
    b_, h_, n_, d_ = out.shape
    out = out.transpose(0, 2, 1, 3).reshape(b_, n_, h_ * d_)
    out = out @ params["wout"]
    return ln(out, params["go"], params["bo"])


if __name__ == "__main__":
    # Small shapes consistent with the module: dim=32, heads=4, dim_head=16.
    batch, n_x, n_latents, dim = 2, 8, 8, 32
    heads, dim_head = 4, 16
    inner = heads * dim_head

    key = jax.random.PRNGKey(0)
    ks = jax.random.split(key, 8)

    x = jax.random.normal(ks[0], (batch, n_x, dim), dtype=jnp.float32)
    latents = jax.random.normal(ks[1], (batch, n_latents, dim), dtype=jnp.float32)

    params = {
        "wq": jax.random.normal(ks[2], (dim, inner), dtype=jnp.float32) * 0.05,
        "wkv": jax.random.normal(ks[3], (dim, 2 * inner), dtype=jnp.float32) * 0.05,
        "wout": jax.random.normal(ks[4], (inner, dim), dtype=jnp.float32) * 0.05,
        "gx": jnp.ones((dim,), jnp.float32) + 0.1 * jax.random.normal(ks[5], (dim,)),
        "bx": 0.1 * jax.random.normal(ks[6], (dim,)),
        "gl": jnp.ones((dim,), jnp.float32),
        "bl": jnp.zeros((dim,), jnp.float32),
        "go": jnp.ones((dim,), jnp.float32) + 0.05 * jax.random.normal(ks[7], (dim,)),
        "bo": jnp.zeros((dim,), jnp.float32),
    }

    ref = reference_jax(x, latents, params, heads=heads, dim_head=dim_head)

    # fp32 MXU operands (v5e-safe default). Slightly relaxed tolerance accounts
    # for the approx reciprocal in the softmax normalizer.
    out = perceiver_attention(x, latents, params, heads=heads, dim_head=dim_head)
    out = jax.block_until_ready(out)
    assert out.shape == (batch, n_latents, dim)
    assert jnp.allclose(out, ref, rtol=5e-3, atol=5e-3), "fp32 kernel mismatch vs JAX reference"

    # bf16 MXU operands (v6e/v7x feedback): fp32 accumulation, fp32 softmax/LN.
    out_bf16 = perceiver_attention(x, latents, params, heads=heads, dim_head=dim_head,
                                   matmul_dtype=jnp.bfloat16)
    out_bf16 = jax.block_until_ready(out_bf16)
    assert jnp.allclose(out_bf16, ref, rtol=1e-1, atol=1e-1), "bf16 kernel mismatch vs JAX reference"

    print("KERNEL_OK")
</pallas_src>

<mosaic_0001>
module attributes {stable_mosaic.version = 11 : i64} {
  func.func @perceiver_attention_kernel(%arg0: i32, %arg1: memref<2x8x32xf32, #tpu.memory_space<vmem>>, %arg2: memref<2x8x32xf32, #tpu.memory_space<vmem>>, %arg3: memref<4x32x16xf32, #tpu.memory_space<vmem>>, %arg4: memref<4x32x16xf32, #tpu.memory_space<vmem>>, %arg5: memref<4x32x16xf32, #tpu.memory_space<vmem>>, %arg6: memref<4x16x32xf32, #tpu.memory_space<vmem>>, %arg7: memref<6x32xf32, #tpu.memory_space<vmem>>, %arg8: memref<2x8x32xf32, #tpu.memory_space<vmem>>) attributes {dimension_semantics = [#tpu.dimension_semantics<parallel>], iteration_bounds = array<i64: 1>, scalar_prefetch = 0 : i64, scratch_operands = 0 : i64, tpu.core_type = #tpu.core_type<tc>, window_params = [{transform_indices = @transform_0, window_bounds = array<i64: 2, 8, 32>}, {transform_indices = @transform_1, window_bounds = array<i64: 2, 8, 32>}, {pipeline_mode = #tpu.pipeline_mode<synchronous>, transform_indices = @transform_2, window_bounds = array<i64: 4, 32, 16>}, {pipeline_mode = #tpu.pipeline_mode<synchronous>, transform_indices = @transform_3, window_bounds = array<i64: 4, 32, 16>}, {pipeline_mode = #tpu.pipeline_mode<synchronous>, transform_indices = @transform_4, window_bounds = array<i64: 4, 32, 16>}, {pipeline_mode = #tpu.pipeline_mode<synchronous>, transform_indices = @transform_5, window_bounds = array<i64: 4, 16, 32>}, {pipeline_mode = #tpu.pipeline_mode<synchronous>, transform_indices = @transform_6, window_bounds = array<i64: 6, 32>}, {transform_indices = @transform_7, window_bounds = array<i64: 2, 8, 32>}]} {
    %c0 = arith.constant 0 : index
    %c0_0 = arith.constant 0 : index
    %0 = vector.load %arg7[%c0, %c0_0] : memref<6x32xf32, #tpu.memory_space<vmem>>, vector<6x32xf32>
    %c0_1 = arith.constant 0 : index
    %c0_2 = arith.constant 0 : index
    %c0_3 = arith.constant 0 : index
    %1 = vector.load %arg1[%c0_1, %c0_2, %c0_3] : memref<2x8x32xf32, #tpu.memory_space<vmem>>, vector<2x8x32xf32>
    %c0_4 = arith.constant 0 : index
    %c0_5 = arith.constant 0 : index
    %c0_6 = arith.constant 0 : index
    %2 = vector.load %arg2[%c0_4, %c0_5, %c0_6] : memref<2x8x32xf32, #tpu.memory_space<vmem>>, vector<2x8x32xf32>
    %3 = vector.extract_strided_slice %0 {offsets = [0, 0], sizes = [1, 32], strides = [1, 1]} : vector<6x32xf32> to vector<1x32xf32>
    %4 = vector.extract_strided_slice %0 {offsets = [1, 0], sizes = [1, 32], strides = [1, 1]} : vector<6x32xf32> to vector<1x32xf32>
    %cst = arith.constant dense<0.000000e+00> : vector<2x8xf32>
    %5 = vector.multi_reduction <add>, %1, %cst [2] : vector<2x8x32xf32> to vector<2x8xf32>
    %6 = vector.shape_cast %5 : vector<2x8xf32> to vector<2x8x1xf32>
    %cst_7 = arith.constant 3.200000e+01 : f32
    %7 = vector.broadcast %cst_7 : f32 to vector<2x8x1xf32>
    %8 = arith.divf %6, %7 : vector<2x8x1xf32>
    %9 = vector.broadcast %8 : vector<2x8x1xf32> to vector<2x8x32xf32>
    %10 = arith.subf %1, %9 : vector<2x8x32xf32>
    %11 = arith.mulf %10, %10 : vector<2x8x32xf32>
    %cst_8 = arith.constant dense<0.000000e+00> : vector<2x8xf32>
    %12 = vector.multi_reduction <add>, %11, %cst_8 [2] : vector<2x8x32xf32> to vector<2x8xf32>
    %13 = vector.shape_cast %12 : vector<2x8xf32> to vector<2x8x1xf32>
    %cst_9 = arith.constant 3.200000e+01 : f32
    %14 = vector.broadcast %cst_9 : f32 to vector<2x8x1xf32>
    %15 = arith.divf %13, %14 : vector<2x8x1xf32>
    %16 = vector.broadcast %8 : vector<2x8x1xf32> to vector<2x8x32xf32>
    %17 = arith.subf %1, %16 : vector<2x8x32xf32>
    %cst_10 = arith.constant 9.99999974E-6 : f32
    %18 = vector.broadcast %cst_10 : f32 to vector<2x8x1xf32>
    %19 = arith.addf %15, %18 : vector<2x8x1xf32>
    %20 = math.rsqrt %19 : vector<2x8x1xf32>
    %21 = vector.broadcast %20 : vector<2x8x1xf32> to vector<2x8x32xf32>
    %22 = arith.mulf %17, %21 : vector<2x8x32xf32>
    %23 = vector.shape_cast %3 : vector<1x32xf32> to vector<1x1x32xf32>
    %24 = vector.broadcast %23 : vector<1x1x32xf32> to vector<2x8x32xf32>
    %25 = arith.mulf %22, %24 : vector<2x8x32xf32>
    %26 = vector.shape_cast %4 : vector<1x32xf32> to vector<1x1x32xf32>
    %27 = vector.broadcast %26 : vector<1x1x32xf32> to vector<2x8x32xf32>
    %28 = arith.addf %25, %27 : vector<2x8x32xf32>
    %29 = vector.extract_strided_slice %0 {offsets = [2, 0], sizes = [1, 32], strides = [1, 1]} : vector<6x32xf32> to vector<1x32xf32>
    %30 = vector.extract_strided_slice %0 {offsets = [3, 0], sizes = [1, 32], strides = [1, 1]} : vector<6x32xf32> to vector<1x32xf32>
    %cst_11 = arith.constant dense<0.000000e+00> : vector<2x8xf32>
    %31 = vector.multi_reduction <add>, %2, %cst_11 [2] : vector<2x8x32xf32> to vector<2x8xf32>
    %32 = vector.shape_cast %31 : vector<2x8xf32> to vector<2x8x1xf32>
    %cst_12 = arith.constant 3.200000e+01 : f32
    %33 = vector.broadcast %cst_12 : f32 to vector<2x8x1xf32>
    %34 = arith.divf %32, %33 : vector<2x8x1xf32>
    %35 = vector.broadcast %34 : vector<2x8x1xf32> to vector<2x8x32xf32>
    %36 = arith.subf %2, %35 : vector<2x8x32xf32>
    %37 = arith.mulf %36, %36 : vector<2x8x32xf32>
    %cst_13 = arith.constant dense<0.000000e+00> : vector<2x8xf32>
    %38 = vector.multi_reduction <add>, %37, %cst_13 [2] : vector<2x8x32xf32> to vector<2x8xf32>
    %39 = vector.shape_cast %38 : vector<2x8xf32> to vector<2x8x1xf32>
    %cst_14 = arith.constant 3.200000e+01 : f32
    %40 = vector.broadcast %cst_14 : f32 to vector<2x8x1xf32>
    %41 = arith.divf %39, %40 : vector<2x8x1xf32>
    %42 = vector.broadcast %34 : vector<2x8x1xf32> to vector<2x8x32xf32>
    %43 = arith.subf %2, %42 : vector<2x8x32xf32>
    %cst_15 = arith.constant 9.99999974E-6 : f32
    %44 = vector.broadcast %cst_15 : f32 to vector<2x8x1xf32>
    %45 = arith.addf %41, %44 : vector<2x8x1xf32>
    %46 = math.rsqrt %45 : vector<2x8x1xf32>
    %47 = vector.broadcast %46 : vector<2x8x1xf32> to vector<2x8x32xf32>
    %48 = arith.mulf %43, %47 : vector<2x8x32xf32>
    %49 = vector.shape_cast %29 : vector<1x32xf32> to vector<1x1x32xf32>
    %50 = vector.broadcast %49 : vector<1x1x32xf32> to vector<2x8x32xf32>
    %51 = arith.mulf %48, %50 : vector<2x8x32xf32>
    %52 = vector.shape_cast %30 : vector<1x32xf32> to vector<1x1x32xf32>
    %53 = vector.broadcast %52 : vector<1x1x32xf32> to vector<2x8x32xf32>
    %54 = arith.addf %51, %53 : vector<2x8x32xf32>
    %55 = vector.shape_cast %28 : vector<2x8x32xf32> to vector<1x2x8x32xf32>
    %56 = vector.shape_cast %55 : vector<1x2x8x32xf32> to vector<1x2x8x32xf32>
    %57 = vector.broadcast %56 : vector<1x2x8x32xf32> to vector<4x2x8x32xf32>
    %58 = vector.shape_cast %57 : vector<4x2x8x32xf32> to vector<8x8x32xf32>
    %59 = vector.shape_cast %54 : vector<2x8x32xf32> to vector<1x2x8x32xf32>
    %60 = vector.shape_cast %59 : vector<1x2x8x32xf32> to vector<1x2x8x32xf32>
    %61 = vector.broadcast %60 : vector<1x2x8x32xf32> to vector<4x2x8x32xf32>
    %62 = vector.shape_cast %61 : vector<4x2x8x32xf32> to vector<8x8x32xf32>
    %c0_16 = arith.constant 0 : index
    %c0_17 = arith.constant 0 : index
    %c0_18 = arith.constant 0 : index
    %63 = vector.load %arg3[%c0_16, %c0_17, %c0_18] : memref<4x32x16xf32, #tpu.memory_space<vmem>>, vector<4x32x16xf32>
    %64 = vector.shape_cast %63 : vector<4x32x16xf32> to vector<4x1x32x16xf32>
    %65 = vector.shape_cast %64 : vector<4x1x32x16xf32> to vector<4x1x32x16xf32>
    %66 = vector.broadcast %65 : vector<4x1x32x16xf32> to vector<4x2x32x16xf32>
    %67 = vector.shape_cast %66 : vector<4x2x32x16xf32> to vector<8x32x16xf32>
    %c0_19 = arith.constant 0 : index
    %c0_20 = arith.constant 0 : index
    %c0_21 = arith.constant 0 : index
    %68 = vector.load %arg4[%c0_19, %c0_20, %c0_21] : memref<4x32x16xf32, #tpu.memory_space<vmem>>, vector<4x32x16xf32>
    %69 = vector.shape_cast %68 : vector<4x32x16xf32> to vector<4x1x32x16xf32>
    %70 = vector.shape_cast %69 : vector<4x1x32x16xf32> to vector<4x1x32x16xf32>
    %71 = vector.broadcast %70 : vector<4x1x32x16xf32> to vector<4x2x32x16xf32>
    %72 = vector.shape_cast %71 : vector<4x2x32x16xf32> to vector<8x32x16xf32>
    %c0_22 = arith.constant 0 : index
    %c0_23 = arith.constant 0 : index
    %c0_24 = arith.constant 0 : index
    %73 = vector.load %arg5[%c0_22, %c0_23, %c0_24] : memref<4x32x16xf32, #tpu.memory_space<vmem>>, vector<4x32x16xf32>
    %74 = vector.shape_cast %73 : vector<4x32x16xf32> to vector<4x1x32x16xf32>
    %75 = vector.shape_cast %74 : vector<4x1x32x16xf32> to vector<4x1x32x16xf32>
    %76 = vector.broadcast %75 : vector<4x1x32x16xf32> to vector<4x2x32x16xf32>
    %77 = vector.shape_cast %76 : vector<4x2x32x16xf32> to vector<8x32x16xf32>
    %c0_25 = arith.constant 0 : index
    %c0_26 = arith.constant 0 : index
    %c0_27 = arith.constant 0 : index
    %78 = vector.load %arg6[%c0_25, %c0_26, %c0_27] : memref<4x16x32xf32, #tpu.memory_space<vmem>>, vector<4x16x32xf32>
    %79 = vector.shape_cast %78 : vector<4x16x32xf32> to vector<4x1x16x32xf32>
    %80 = vector.shape_cast %79 : vector<4x1x16x32xf32> to vector<4x1x16x32xf32>
    %81 = vector.broadcast %80 : vector<4x1x16x32xf32> to vector<4x2x16x32xf32>
    %82 = vector.shape_cast %81 : vector<4x2x16x32xf32> to vector<8x16x32xf32>
    "tpu.trace_start"() <{level = 10 : i32, message = "gnd,gdf->gnf"}> : () -> ()
    %cst_28 = arith.constant dense<0.000000e+00> : vector<8x8x16xf32>
    %83 = tpu.matmul %62, %67, %cst_28 {dimension_numbers = #tpu.dot_dimension_numbers<[2], [1], [1], [2], [0, 0, 0, 1, 1, 2], [0], [0]>} : vector<8x8x32xf32>, vector<8x32x16xf32>, vector<8x8x16xf32> -> vector<8x8x16xf32>
    "tpu.trace_stop"() : () -> ()
    %cst_29 = arith.constant 2.500000e-01 : f32
    %84 = vector.broadcast %cst_29 : f32 to vector<8x8x16xf32>
    %85 = arith.mulf %83, %84 : vector<8x8x16xf32>
    "tpu.trace_start"() <{level = 10 : i32, message = "gnd,gdf->gnf"}> : () -> ()
    %cst_30 = arith.constant dense<0.000000e+00> : vector<8x8x16xf32>
    %86 = tpu.matmul %58, %72, %cst_30 {dimension_numbers = #tpu.dot_dimension_numbers<[2], [1], [1], [2], [0, 0, 0, 1, 1, 2], [0], [0]>} : vector<8x8x32xf32>, vector<8x32x16xf32>, vector<8x8x16xf32> -> vector<8x8x16xf32>
    %cst_31 = arith.constant dense<0.000000e+00> : vector<8x8x16xf32>
    %87 = tpu.matmul %62, %72, %cst_31 {dimension_numbers = #tpu.dot_dimension_numbers<[2], [1], [1], [2], [0, 0, 0, 1, 1, 2], [0], [0]>} : vector<8x8x32xf32>, vector<8x32x16xf32>, vector<8x8x16xf32> -> vector<8x8x16xf32>
    %cst_32 = arith.constant dense<0.000000e+00> : vector<8x8x16xf32>
    %88 = tpu.matmul %58, %77, %cst_32 {dimension_numbers = #tpu.dot_dimension_numbers<[2], [1], [1], [2], [0, 0, 0, 1, 1, 2], [0], [0]>} : vector<8x8x32xf32>, vector<8x32x16xf32>, vector<8x8x16xf32> -> vector<8x8x16xf32>
    %cst_33 = arith.constant dense<0.000000e+00> : vector<8x8x16xf32>
    %89 = tpu.matmul %62, %77, %cst_33 {dimension_numbers = #tpu.dot_dimension_numbers<[2], [1], [1], [2], [0, 0, 0, 1, 1, 2], [0], [0]>} : vector<8x8x32xf32>, vector<8x32x16xf32>, vector<8x8x16xf32> -> vector<8x8x16xf32>
    "tpu.trace_stop"() : () -> ()
    "tpu.trace_start"() <{level = 10 : i32, message = "gqf,gkf->gqk"}> : () -> ()
    %cst_34 = arith.constant dense<0.000000e+00> : vector<8x8x8xf32>
    %90 = tpu.matmul %85, %86, %cst_34 {dimension_numbers = #tpu.dot_dimension_numbers<[2], [2], [1], [1], [0, 0, 0, 1, 1, 1], [0], [0]>} : vector<8x8x16xf32>, vector<8x8x16xf32>, vector<8x8x8xf32> -> vector<8x8x8xf32>
    %cst_35 = arith.constant dense<0.000000e+00> : vector<8x8x8xf32>
    %91 = tpu.matmul %85, %87, %cst_35 {dimension_numbers = #tpu.dot_dimension_numbers<[2], [2], [1], [1], [0, 0, 0, 1, 1, 1], [0], [0]>} : vector<8x8x16xf32>, vector<8x8x16xf32>, vector<8x8x8xf32> -> vector<8x8x8xf32>
    "tpu.trace_stop"() : () -> ()
    %cst_36 = arith.constant dense<0xFF800000> : vector<8x8xf32>
    %92 = vector.multi_reduction <maximumf>, %90, %cst_36 [2] : vector<8x8x8xf32> to vector<8x8xf32>
    %93 = vector.shape_cast %92 : vector<8x8xf32> to vector<8x8x1xf32>
    %cst_37 = arith.constant dense<0xFF800000> : vector<8x8xf32>
    %94 = vector.multi_reduction <maximumf>, %91, %cst_37 [2] : vector<8x8x8xf32> to vector<8x8xf32>
    %95 = vector.shape_cast %94 : vector<8x8xf32> to vector<8x8x1xf32>
    %96 = arith.maximumf %93, %95 : vector<8x8x1xf32>
    %97 = vector.broadcast %96 : vector<8x8x1xf32> to vector<8x8x8xf32>
    %98 = arith.subf %90, %97 : vector<8x8x8xf32>
    %99 = math.exp %98 : vector<8x8x8xf32>
    %100 = vector.broadcast %96 : vector<8x8x1xf32> to vector<8x8x8xf32>
    %101 = arith.subf %91, %100 : vector<8x8x8xf32>
    %102 = math.exp %101 : vector<8x8x8xf32>
    %cst_38 = arith.constant dense<0.000000e+00> : vector<8x8xf32>
    %103 = vector.multi_reduction <add>, %99, %cst_38 [2] : vector<8x8x8xf32> to vector<8x8xf32>
    %104 = vector.shape_cast %103 : vector<8x8xf32> to vector<8x8x1xf32>
    %cst_39 = arith.constant dense<0.000000e+00> : vector<8x8xf32>
    %105 = vector.multi_reduction <add>, %102, %cst_39 [2] : vector<8x8x8xf32> to vector<8x8xf32>
    %106 = vector.shape_cast %105 : vector<8x8xf32> to vector<8x8x1xf32>
    %107 = arith.addf %104, %106 : vector<8x8x1xf32>
    %108 = tpu.reciprocal %107 {approx = true} : vector<8x8x1xf32> -> vector<8x8x1xf32>
    "tpu.trace_start"() <{level = 10 : i32, message = "gqk,gkf->gqf"}> : () -> ()
    %cst_40 = arith.constant dense<0.000000e+00> : vector<8x8x16xf32>
    %109 = tpu.matmul %99, %88, %cst_40 {dimension_numbers = #tpu.dot_dimension_numbers<[2], [1], [1], [2], [0, 0, 0, 1, 1, 2], [0], [0]>} : vector<8x8x8xf32>, vector<8x8x16xf32>, vector<8x8x16xf32> -> vector<8x8x16xf32>
    %cst_41 = arith.constant dense<0.000000e+00> : vector<8x8x16xf32>
    %110 = tpu.matmul %102, %89, %cst_41 {dimension_numbers = #tpu.dot_dimension_numbers<[2], [1], [1], [2], [0, 0, 0, 1, 1, 2], [0], [0]>} : vector<8x8x8xf32>, vector<8x8x16xf32>, vector<8x8x16xf32> -> vector<8x8x16xf32>
    "tpu.trace_stop"() : () -> ()
    %111 = arith.addf %109, %110 : vector<8x8x16xf32>
    %112 = vector.broadcast %108 : vector<8x8x1xf32> to vector<8x8x16xf32>
    %113 = arith.mulf %111, %112 : vector<8x8x16xf32>
    "tpu.trace_start"() <{level = 10 : i32, message = "gqf,gfd->gqd"}> : () -> ()
    %cst_42 = arith.constant dense<0.000000e+00> : vector<8x8x32xf32>
    %114 = tpu.matmul %113, %82, %cst_42 {dimension_numbers = #tpu.dot_dimension_numbers<[2], [1], [1], [2], [0, 0, 0, 1, 1, 2], [0], [0]>} : vector<8x8x16xf32>, vector<8x16x32xf32>, vector<8x8x32xf32> -> vector<8x8x32xf32>
    "tpu.trace_stop"() : () -> ()
    %115 = vector.shape_cast %114 : vector<8x8x32xf32> to vector<4x2x8x32xf32>
    %cst_43 = arith.constant dense<0.000000e+00> : vector<2x8x32xf32>
    %116 = vector.multi_reduction <add>, %115, %cst_43 [0] : vector<4x2x8x32xf32> to vector<2x8x32xf32>
    %117 = vector.extract_strided_slice %0 {offsets = [4, 0], sizes = [1, 32], strides = [1, 1]} : vector<6x32xf32> to vector<1x32xf32>
    %118 = vector.extract_strided_slice %0 {offsets = [5, 0], sizes = [1, 32], strides = [1, 1]} : vector<6x32xf32> to vector<1x32xf32>
    %cst_44 = arith.constant dense<0.000000e+00> : vector<2x8xf32>
    %119 = vector.multi_reduction <add>, %116, %cst_44 [2] : vector<2x8x32xf32> to vector<2x8xf32>
    %120 = vector.shape_cast %119 : vector<2x8xf32> to vector<2x8x1xf32>
    %cst_45 = arith.constant 3.200000e+01 : f32
    %121 = vector.broadcast %cst_45 : f32 to vector<2x8x1xf32>
    %122 = arith.divf %120, %121 : vector<2x8x1xf32>
    %123 = vector.broadcast %122 : vector<2x8x1xf32> to vector<2x8x32xf32>
    %124 = arith.subf %116, %123 : vector<2x8x32xf32>
    %125 = arith.mulf %124, %124 : vector<2x8x32xf32>
    %cst_46 = arith.constant dense<0.000000e+00> : vector<2x8xf32>
    %126 = vector.multi_reduction <add>, %125, %cst_46 [2] : vector<2x8x32xf32> to vector<2x8xf32>
    %127 = vector.shape_cast %126 : vector<2x8xf32> to vector<2x8x1xf32>
    %cst_47 = arith.constant 3.200000e+01 : f32
    %128 = vector.broadcast %cst_47 : f32 to vector<2x8x1xf32>
    %129 = arith.divf %127, %128 : vector<2x8x1xf32>
    %130 = vector.broadcast %122 : vector<2x8x1xf32> to vector<2x8x32xf32>
    %131 = arith.subf %116, %130 : vector<2x8x32xf32>
    %cst_48 = arith.constant 9.99999974E-6 : f32
    %132 = vector.broadcast %cst_48 : f32 to vector<2x8x1xf32>
    %133 = arith.addf %129, %132 : vector<2x8x1xf32>
    %134 = math.rsqrt %133 : vector<2x8x1xf32>
    %135 = vector.broadcast %134 : vector<2x8x1xf32> to vector<2x8x32xf32>
    %136 = arith.mulf %131, %135 : vector<2x8x32xf32>
    %137 = vector.shape_cast %117 : vector<1x32xf32> to vector<1x1x32xf32>
    %138 = vector.broadcast %137 : vector<1x1x32xf32> to vector<2x8x32xf32>
    %139 = arith.mulf %136, %138 : vector<2x8x32xf32>
    %140 = vector.shape_cast %118 : vector<1x32xf32> to vector<1x1x32xf32>
    %141 = vector.broadcast %140 : vector<1x1x32xf32> to vector<2x8x32xf32>
    %142 = arith.addf %139, %141 : vector<2x8x32xf32>
    %c0_49 = arith.constant 0 : index
    %c0_50 = arith.constant 0 : index
    %c0_51 = arith.constant 0 : index
    %143 = vector.load %arg8[%c0_49, %c0_50, %c0_51] : memref<2x8x32xf32, #tpu.memory_space<vmem>>, vector<2x8x32xf32>
    tpu.vector_store %arg8[%c0_49, %c0_50, %c0_51], %142 {strides = array<i32>} : memref<2x8x32xf32, #tpu.memory_space<vmem>>, vector<2x8x32xf32>,
    return
  }
  func.func @transform_0(%arg0: i32) -> (i32, i32, i32) {
    %c0_i32 = arith.constant 0 : i32
    %c0_i32_0 = arith.constant 0 : i32
    %c0_i32_1 = arith.constant 0 : i32
    return %arg0, %c0_i32, %c0_i32_0 : i32, i32, i32
  }
  func.func @transform_1(%arg0: i32) -> (i32, i32, i32) {
    %c0_i32 = arith.constant 0 : i32
    %c0_i32_0 = arith.constant 0 : i32
    %c0_i32_1 = arith.constant 0 : i32
    return %arg0, %c0_i32, %c0_i32_0 : i32, i32, i32
  }
  func.func @transform_2(%arg0: i32) -> (i32, i32, i32) {
    %c0_i32 = arith.constant 0 : i32
    %c0_i32_0 = arith.constant 0 : i32
    %c0_i32_1 = arith.constant 0 : i32
    %c0_i32_2 = arith.constant 0 : i32
    return %c0_i32, %c0_i32_0, %c0_i32_1 : i32, i32, i32
  }
  func.func @transform_3(%arg0: i32) -> (i32, i32, i32) {
    %c0_i32 = arith.constant 0 : i32
    %c0_i32_0 = arith.constant 0 : i32
    %c0_i32_1 = arith.constant 0 : i32
    %c0_i32_2 = arith.constant 0 : i32
    return %c0_i32, %c0_i32_0, %c0_i32_1 : i32, i32, i32
  }
  func.func @transform_4(%arg0: i32) -> (i32, i32, i32) {
    %c0_i32 = arith.constant 0 : i32
    %c0_i32_0 = arith.constant 0 : i32
    %c0_i32_1 = arith.constant 0 : i32
    %c0_i32_2 = arith.constant 0 : i32
    return %c0_i32, %c0_i32_0, %c0_i32_1 : i32, i32, i32
  }
  func.func @transform_5(%arg0: i32) -> (i32, i32, i32) {
    %c0_i32 = arith.constant 0 : i32
    %c0_i32_0 = arith.constant 0 : i32
    %c0_i32_1 = arith.constant 0 : i32
    %c0_i32_2 = arith.constant 0 : i32
    return %c0_i32, %c0_i32_0, %c0_i32_1 : i32, i32, i32
  }
  func.func @transform_6(%arg0: i32) -> (i32, i32) {
    %c0_i32 = arith.constant 0 : i32
    %c0_i32_0 = arith.constant 0 : i32
    %c0_i32_1 = arith.constant 0 : i32
    return %c0_i32, %c0_i32_0 : i32, i32
  }
  func.func @transform_7(%arg0: i32) -> (i32, i32, i32) {
    %c0_i32 = arith.constant 0 : i32
    %c0_i32_0 = arith.constant 0 : i32
    %c0_i32_1 = arith.constant 0 : i32
    return %arg0, %c0_i32, %c0_i32_0 : i32, i32, i32
  }
}

</mosaic_0001>

<bundles_post_ra>
// kernel: tpu_custom_call.1
= control target key start
LH: loop header
LB: loop body
LE: loop exit
PB: predicated region body
PF: predicated region fallthrough
CT: control target
= control target key end

     0   :  { %vm32_vm0 = vcmask 261120   ;;  %s8443_s0 = inlined_call_operand.vmem [shape: f32[2,8,32], index: 0, kind: input, shape index: {}]   ;;  %s8444_s1 = inlined_call_operand.vmem [shape: f32[2,8,32], index: 1, kind: input, shape index: {}]   ;;  %s8445_s2 = inlined_call_operand.vmem [shape: f32[4,32,16], index: 2, kind: input, shape index: {}]   ;;  %s8446_s3 = inlined_call_operand.vmem [shape: f32[4,32,16], index: 3, kind: input, shape index: {}]   ;;  %s8447_s4 = inlined_call_operand.vmem [shape: f32[4,32,16], index: 4, kind: input, shape index: {}]   ;;  %s8448_s5 = inlined_call_operand.vmem [shape: f32[4,16,32], index: 5, kind: input, shape index: {}]   ;;  %s8449_s6 = inlined_call_operand.vmem [shape: f32[6,32], index: 6, kind: input, shape index: {}]   ;;  %s8450_s7 = inlined_call_operand.hbm [shape: f32[2,8,32], index: 7, kind: output, shape index: {}]  }
   0x1   :  { %v30_v0 = vld [vmem:[%s8444_s1] sm:$0xff]  ;;  %v31_v1 = vld [vmem:[%s8444_s1 + $0x8] sm:$0xff] }
   0x2   :  { %v28_v2 = vld [vmem:[%s8443_s0] sm:$0xff]  ;;  %v72_v3 = vsel %vm32_vm0, %v30_v0, 0.0  ;;  %v29_v5 = vld [vmem:[%s8443_s0 + $0x8] sm:$0xff] }
   0x3   :  { %v33_v4 = vsel %vm32_vm0, %v28_v2, 0.0 }
   0x4   :  { %12 = vsyncpa [#allocation3], 0  ;;  %73 = vadd.xlane.f32.xlu0 %v72_v3  ;;  %34 = vadd.xlane.f32.xlu1 %v33_v4  ;;  %v75_v6 = vsel %vm32_vm0, %v31_v1, 0.0  ;;  %v36_v7 = vsel %vm32_vm0, %v29_v5, 0.0  ;;  %v7306_v28 = vmov 0.0   ;;  %v113_v29 = vld [vmem:[%s8445_s2 + $0x18] sm:$0xff]  ;;  %v60_v37 = vlaneseq }
   0x5   :  { %6562 = vmatprep.subr.mxu0 %v7306_v28  ;;  %6573 = vmatprep.subr.mxu1 %v7306_v28  ;;  %v112_v30 = vld [vmem:[%s8445_s2 + $0x10] sm:$0xff]  ;;  %v111_v31 = vld [vmem:[%s8445_s2 + $0x8] sm:$0xff]  ;;  %v110_v32 = vld [vmem:[%s8445_s2] sm:$0xff]  ;;  %vm7307_vm1 = vmmov 0   ;;  %vm2986_vm2 = vcmask 130048   ;;  %vm4179_vm3 = vcmask 64512  }
   0x6   :  { %6563 = vmatpush3.msra.mxu0 %v113_v29  ;;  %6574 = vmatpush3.msra.mxu1 %v113_v29  ;;  %v7405_v40 = vshrl.u32 %v60_v37, 7  ;;  %v7411_v42 = vld [vmem:[%s8449_s6] sm:$0x3f]  ;;  %v117_v51 = vld [vmem:[%s8445_s2 + $0x38] sm:$0xff]  ;;  %v116_v53 = vld [vmem:[%s8445_s2 + $0x30] sm:$0xff]  ;;  %s7308_s16 = smov [#allocation2]  }
   0x7   :  { %6564 = vmatprep.subr.mxu0 %v7306_v28  ;;  %6575 = vmatprep.subr.mxu1 %v7306_v28  ;;  %v115_v56 = vld [vmem:[%s8445_s2 + $0x28] sm:$0xff]  ;;  %v114_v59 = vld [vmem:[%s8445_s2 + $0x20] sm:$0xff]  ;;  %v121_v61 = vld [vmem:[%s8445_s2 + $0x58] sm:$0xff]  ;;  %s6167_s17 = sshll.u32 %s7308_s16, 4  ;;  %s6168_s17 = int_to_ptr.vmem [resolvable:$true] %s6167_s17 }
   0x8   :  { %76 = vadd.xlane.f32.xlu0 %v75_v6  ;;  %37 = vadd.xlane.f32.xlu1 %v36_v7  ;;  %v100_v41 = vsub.s32 2, %v7405_v40  ;;  %v106_v43 = vsub.s32 3, %v7405_v40  ;;  %v118_v3 = vld [vmem:[%s8445_s2 + $0x40] sm:$0xff]  ;;  %v125_v4 = vld [vmem:[%s8445_s2 + $0x78] sm:$0xff]  ;;  %v123_v6 = vld [vmem:[%s8445_s2 + $0x68] sm:$0xff]  ;;  %v62_v7 = vsub.s32 0, %v7405_v40  ;;  %p7289_p1 = scmp.lt.s32.totalorder %s6168_s17, %s6168_s17 }
   0x9   :  { %6565 = vmatpush3.msra.mxu0 %v112_v30  ;;  %6576 = vmatpush3.msra.mxu1 %v112_v30  ;;  %v7596_v29 = vld [vmem:[%s8446_s3 + $0x58] sm:$0xff]  ;;  %v7608_v30 = vld [vmem:[%s8446_s3 + $0x50] sm:$0xff] }
   0xa   :  { %6566 = vmatprep.subr.mxu0 %v7306_v28  ;;  %6577 = vmatprep.subr.mxu1 %v7306_v28  ;;  %v101_v44 = vrot.slane %v7411_v42, %v100_v41  ;;  %v107_v47 = vrot.slane %v7411_v42, %v106_v43  ;;  %v7780_v37 = vld [vmem:[%s8447_s4 + $0x18] sm:$0xff]  ;;  %v7812_v41 = vld [vmem:[%s8447_s4] sm:$0xff]  ;;  %v7836_v43 = vld [vmem:[%s8447_s4 + $0x30] sm:$0xff] }
   0xb   :  { %6567 = vmatpush3.msra.mxu0 %v111_v31  ;;  %6578 = vmatpush3.msra.mxu1 %v111_v31  ;;  %v7618_v31 = vld [vmem:[%s8446_s3 + $0x48] sm:$0xff] }
   0xc   :  { %6568 = vmatprep.subr.mxu0 %v7306_v28  ;;  %6579 = vmatprep.subr.mxu1 %v7306_v28 }
   0xd   :  { %6569 = vmatpush3.msra.mxu0 %v110_v32  ;;  %6580 = vmatpush3.msra.mxu1 %v110_v32  ;;  %v7628_v32 = vld [vmem:[%s8446_s3 + $0x40] sm:$0xff] }
   0xe   :  { %6570 = vmatprep.mubr.msk.f32.mxu0 %vm7307_vm1, %v7306_v28  ;;  %6584 = vmatprep.subr.mxu0 %v7306_v28 }
   0xf   :  { %6581 = vmatprep.mubr.msk.f32.mxu1 %vm7307_vm1, %v7306_v28  ;;  %6595 = vmatprep.subr.mxu1 %v7306_v28 }
  0x8d   :  { %v74_v8 = vpop.xlane.xlu0 %73  ;;  %v35_v9 = vpop.xlane.xlu1 %34 }
  0x8e   :  { %v78_v10 = vmul.f32 0.03125, %v74_v8  ;;  %v40_v11 = vmul.f32 0.03125, %v35_v9  ;;  %v122_v8 = vld [vmem:[%s8445_s2 + $0x60] sm:$0xff] }
  0x90   :  { %v80_v12 = vsub.f32 %v30_v0, %v78_v10  ;;  %v7367_v13 = vsub.f32 %v28_v2, %v40_v11  ;;  %v120_v0 = vld [vmem:[%s8445_s2 + $0x50] sm:$0xff]  ;;  %v7502_v10 = vld [vmem:[%s8446_s3 + $0x18] sm:$0xff]  ;;  %v68_v11 = vsub.s32 1, %v7405_v40 }
  0x91   :  { %v77_v14 = vpop.xlane.xlu0 %76  ;;  %v38_v15 = vpop.xlane.xlu1 %37 }
  0x92   :  { %v79_v16 = vmul.f32 0.03125, %v77_v14  ;;  %v82_v17 = vmul.f32 %v80_v12, %v80_v12  ;;  %v41_v18 = vmul.f32 0.03125, %v38_v15  ;;  %v44_v19 = vmul.f32 %v7367_v13, %v7367_v13 }
  0x93   :  { %v63_v14 = vrot.slane %v7411_v42, %v62_v7 }
  0x94   :  { %v81_v20 = vsub.f32 %v31_v1, %v79_v16  ;;  %v84_v21 = vsel %vm32_vm0, %v82_v17, 0.0  ;;  %v7372_v22 = vsub.f32 %v29_v5, %v41_v18  ;;  %v46_v24 = vsel %vm32_vm0, %v44_v19, 0.0  ;;  %v119_v1 = vld [vmem:[%s8445_s2 + $0x48] sm:$0xff]  ;;  %v124_v5 = vld [vmem:[%s8445_s2 + $0x70] sm:$0xff]  ;;  %s7284_s2 = scalar_lea.vmem %s6168_s17, 256 }
  0x95   :  { %85 = vadd.xlane.f32.xlu0 %v84_v21  ;;  %v7515_v16 = vld [vmem:[%s8446_s3 + $0x10] sm:$0xff]  ;;  %v69_v17 = vrot.slane %v7411_v42, %v68_v11  ;;  %v7525_v18 = vld [vmem:[%s8446_s3 + $0x8] sm:$0xff]  ;;  %v7824_v42 = vld [vmem:[%s8447_s4 + $0x38] sm:$0xff]  ;;  %p7285_p0 = scmp.ne.s32.totalorder %s6168_s17, %s7284_s2  ;;  %p7290_p2 = scmp.lt.s32.totalorder %s7284_s2, %s7284_s2 }
  0x96   :  { %v83_v23 = vmul.f32 %v81_v20, %v81_v20  ;;  %v45_v25 = vmul.f32 %v7372_v22, %v7372_v22 }
  0x97   :  { %p7291_p3 = por %p7290_p2, %p7289_p1 }
  0x98   :  { %v87_v26 = vsel %vm32_vm0, %v83_v23, 0.0  ;;  %v49_v27 = vsel %vm32_vm0, %v45_v25, 0.0  ;;  %v7550_v23 = vld [vmem:[%s8446_s3 + $0x38] sm:$0xff] }
  0x99   :  { %88 = vadd.xlane.f32.xlu1 %v87_v26  ;;  %47 = vadd.xlane.f32.xlu0 %v46_v24  ;;  %v7562_v24 = vld [vmem:[%s8446_s3 + $0x30] sm:$0xff]  ;;  %v7574_v26 = vld [vmem:[%s8446_s3 + $0x28] sm:$0xff]  ;;  %p7292_p4 = pnand %p7291_p3, %p7285_p0 }
  0x9d   :  { %50 = vadd.xlane.f32.xlu1 %v49_v27  ;;  %v7584_v27 = vld [vmem:[%s8446_s3 + $0x20] sm:$0xff] }
 0x11e   :  { %v86_v33 = vpop.xlane.xlu0 %85 }
 0x11f   :  { %v90_v34 = vmul.f32 0.03125, %v86_v33  ;;  %v7640_v33 = vld [vmem:[%s8446_s3 + $0x78] sm:$0xff] }
 0x121   :  { %v92_v35 = vadd.f32 1e-05, %v90_v34  ;;  %v7652_v34 = vld [vmem:[%s8446_s3 + $0x70] sm:$0xff] }
 0x122   :  { %v89_v36 = vpop.xlane.xlu1 %88  ;;  %v48_v54 = vpop.xlane.xlu0 %47 }
 0x123   :  { %7223 = vrsqrt.f32 %v92_v35  ;;  %v91_v38 = vmul.f32 0.03125, %v89_v36  ;;  %v52_v58 = vmul.f32 0.03125, %v48_v54  ;;  %v7662_v35 = vld [vmem:[%s8446_s3 + $0x68] sm:$0xff]  ;;  %v7672_v36 = vld [vmem:[%s8446_s3 + $0x60] sm:$0xff] }
 0x124   :  { %v7944_v54 = vld [vmem:[%s8447_s4 + $0x60] sm:$0xff] }
 0x125   :  { %v93_v39 = vadd.f32 1e-05, %v91_v38  ;;  %v54_v62 = vadd.f32 1e-05, %v52_v58  ;;  %v7792_v38 = vld [vmem:[%s8447_s4 + $0x10] sm:$0xff] }
 0x126   :  { %v51_v60 = vpop.xlane.xlu1 %50 }
 0x127   :  { %7225 = vrsqrt.f32 %v93_v39  ;;  %v53_v63 = vmul.f32 0.03125, %v51_v60  ;;  %v7802_v39 = vld [vmem:[%s8447_s4 + $0x8] sm:$0xff] }
 0x128   :  { %7227 = vrsqrt.f32 %v54_v62 }
 0x129   :  { %v55_v2 = vadd.f32 1e-05, %v53_v63 }
 0x12b   :  { %7229 = vrsqrt.f32 %v55_v2 }
 0x130   :  { %v7224_v45 = vpop.eup %7223 }
 0x131   :  { %v96_v46 = vmul.f32 %v7224_v45, %v80_v12  ;;  %v7856_v45 = vld [vmem:[%s8447_s4 + $0x20] sm:$0xff] }
 0x133   :  { %v102_v48 = vmul.f32 %v101_v44, %v96_v46  ;;  %v7868_v46 = vld [vmem:[%s8447_s4 + $0x58] sm:$0xff] }
 0x134   :  { %v7226_v49 = vpop.eup %7225 }
 0x135   :  { %v7416_v50 = vadd.f32 %v107_v47, %v102_v48  ;;  %v97_v52 = vmul.f32 %v7226_v49, %v81_v20  ;;  %v7228_v9 = vpop.eup %7227  ;;  %v7536_v20 = vld [vmem:[%s8446_s3] sm:$0xff]  ;;  %v7890_v48 = vld [vmem:[%s8447_s4 + $0x48] sm:$0xff] }
 0x136   :  { %v58_v12 = vmul.f32 %v7228_v9, %v7367_v13  ;;  %v7900_v49 = vld [vmem:[%s8447_s4 + $0x40] sm:$0xff] }
 0x137   :  { %6571 = vmatmul.mubr.msk.f32.vlgmr.msra.gmra.mxu0 %vm32_vm0, %v7416_v50  ;;  %v103_v55 = vmul.f32 %v101_v44, %v97_v52  ;;  %v7846_v44 = vld [vmem:[%s8447_s4 + $0x28] sm:$0xff]  ;;  %v7924_v52 = vld [vmem:[%s8447_s4 + $0x70] sm:$0xff] }
 0x138   :  { %6585 = vmatpush3.msra.mxu0 %v117_v51  ;;  %6592 = vmatprep.mubr.msk.f32.mxu0 %vm7307_vm1, %v7306_v28  ;;  %v7230_v15 = vpop.eup %7229  ;;  %v64_v13 = vmul.f32 %v63_v14, %v58_v12 }
 0x139   :  { %6586 = vmatprep.subr.mxu0 %v7306_v28  ;;  %v7432_v57 = vadd.f32 %v107_v47, %v103_v55  ;;  %v59_v19 = vmul.f32 %v7230_v15, %v7372_v22  ;;  %v7880_v47 = vld [vmem:[%s8447_s4 + $0x50] sm:$0xff] }
 0x13a   :  { %6587 = vmatpush3.msra.mxu0 %v116_v53  ;;  %v7540_v21 = vadd.f32 %v69_v17, %v64_v13 }
 0x13b   :  { %6588 = vmatprep.subr.mxu0 %v7306_v28  ;;  %6582 = vmatmul.mubr.msk.f32.vlgmr.msra.gmra.mxu1 %vm32_vm0, %v7432_v57  ;;  %v65_v22 = vmul.f32 %v63_v14, %v59_v19 }
 0x13c   :  { %6589 = vmatpush3.msra.mxu0 %v115_v56  ;;  %6596 = vmatpush3.msra.mxu1 %v117_v51  ;;  %v7912_v51 = vld [vmem:[%s8447_s4 + $0x78] sm:$0xff] }
 0x13d   :  { %6590 = vmatprep.subr.mxu0 %v7306_v28  ;;  %6597 = vmatprep.subr.mxu1 %v7306_v28  ;;  %v7564_v25 = vadd.f32 %v69_v17, %v65_v22 }
 0x13e   :  { %6591 = vmatpush3.msra.mxu0 %v114_v59  ;;  %6598 = vmatpush3.msra.mxu1 %v116_v53  ;;  %v7934_v53 = vld [vmem:[%s8447_s4 + $0x68] sm:$0xff] }
 0x13f   :  { %6593 = vmatmul.mubr.msk.f32.vlgmr.msra.gmra.mxu0 %vm32_vm0, %v7416_v50  ;;  %6599 = vmatprep.subr.mxu1 %v7306_v28 }
 0x140   :  { %6606 = vmatprep.subr.mxu0 %v7306_v28  ;;  %6600 = vmatpush3.msra.mxu1 %v115_v56 }
 0x141   :  { %6607 = vmatpush3.msra.mxu0 %v121_v61  ;;  %6601 = vmatprep.subr.mxu1 %v7306_v28 }
 0x142   :  { %6608 = vmatprep.subr.mxu0 %v7306_v28  ;;  %6602 = vmatpush3.msra.mxu1 %v114_v59 }
 0x143   :  { %6603 = vmatprep.mubr.msk.f32.mxu1 %vm7307_vm1, %v7306_v28  ;;  %6609 = vmatpush3.msra.mxu0 %v120_v0 }
 0x144   :  { %6604 = vmatmul.mubr.msk.f32.vlgmr.msra.gmra.mxu1 %vm32_vm0, %v7432_v57  ;;  %6610 = vmatprep.subr.mxu0 %v7306_v28 }
 0x145   :  { %6617 = vmatprep.subr.mxu1 %v7306_v28  ;;  %6611 = vmatpush3.msra.mxu0 %v119_v1 }
 0x146   :  { %6618 = vmatpush3.msra.mxu1 %v121_v61  ;;  %6612 = vmatprep.subr.mxu0 %v7306_v28 }
 0x147   :  { %6619 = vmatprep.subr.mxu1 %v7306_v28  ;;  %6613 = vmatpush3.msra.mxu0 %v118_v3 }
 0x148   :  { %6614 = vmatprep.mubr.msk.f32.mxu0 %vm7307_vm1, %v7306_v28  ;;  %6620 = vmatpush3.msra.mxu1 %v120_v0 }
 0x149   :  { %6615 = vmatmul.mubr.msk.f32.vlgmr.msra.gmra.mxu0 %vm32_vm0, %v7416_v50  ;;  %6621 = vmatprep.subr.mxu1 %v7306_v28 }
 0x14a   :  { %6628 = vmatprep.subr.mxu0 %v7306_v28  ;;  %6622 = vmatpush3.msra.mxu1 %v119_v1 }
 0x14b   :  { %6629 = vmatpush3.msra.mxu0 %v125_v4  ;;  %6623 = vmatprep.subr.mxu1 %v7306_v28 }
 0x14c   :  { %6630 = vmatprep.subr.mxu0 %v7306_v28  ;;  %6624 = vmatpush3.msra.mxu1 %v118_v3 }
 0x14d   :  { %6625 = vmatprep.mubr.msk.f32.mxu1 %vm7307_vm1, %v7306_v28  ;;  %6631 = vmatpush3.msra.mxu0 %v124_v5 }
 0x14e   :  { %6626 = vmatmul.mubr.msk.f32.vlgmr.msra.gmra.mxu1 %vm32_vm0, %v7432_v57  ;;  %6632 = vmatprep.subr.mxu0 %v7306_v28 }
 0x14f   :  { %6639 = vmatprep.subr.mxu1 %v7306_v28  ;;  %6633 = vmatpush3.msra.mxu0 %v123_v6 }
 0x150   :  { %6640 = vmatpush3.msra.mxu1 %v125_v4  ;;  %6634 = vmatprep.subr.mxu0 %v7306_v28 }
 0x151   :  { %6641 = vmatprep.subr.mxu1 %v7306_v28  ;;  %6635 = vmatpush3.msra.mxu0 %v122_v8 }
 0x152   :  { %6636 = vmatprep.mubr.msk.f32.mxu0 %vm7307_vm1, %v7306_v28  ;;  %6642 = vmatpush3.msra.mxu1 %v124_v5 }
 0x153   :  { %6637 = vmatmul.mubr.msk.f32.vlgmr.msra.gmra.mxu0 %vm32_vm0, %v7416_v50  ;;  %6643 = vmatprep.subr.mxu1 %v7306_v28 }
 0x154   :  { %6650 = vmatprep.subr.mxu0 %v7306_v28  ;;  %6644 = vmatpush3.msra.mxu1 %v123_v6 }
 0x155   :  { %6651 = vmatpush3.msra.mxu0 %v7502_v10  ;;  %6645 = vmatprep.subr.mxu1 %v7306_v28 }
 0x156   :  { %6652 = vmatprep.subr.mxu0 %v7306_v28  ;;  %6646 = vmatpush3.msra.mxu1 %v122_v8 }
 0x157   :  { %6647 = vmatprep.mubr.msk.f32.mxu1 %vm7307_vm1, %v7306_v28  ;;  %6653 = vmatpush3.msra.mxu0 %v7515_v16 }
 0x158   :  { %6648 = vmatmul.mubr.msk.f32.vlgmr.msra.gmra.mxu1 %vm32_vm0, %v7432_v57  ;;  %6654 = vmatprep.subr.mxu0 %v7306_v28 }
 0x159   :  { %6661 = vmatprep.subr.mxu1 %v7306_v28  ;;  %6655 = vmatpush3.msra.mxu0 %v7525_v18 }
 0x15a   :  { %6662 = vmatpush3.msra.mxu1 %v7502_v10  ;;  %6656 = vmatprep.subr.mxu0 %v7306_v28 }
 0x15b   :  { %6663 = vmatprep.subr.mxu1 %v7306_v28  ;;  %6657 = vmatpush3.msra.mxu0 %v7536_v20 }
 0x15c   :  { %6658 = vmatprep.mubr.msk.f32.mxu0 %vm7307_vm1, %v7306_v28  ;;  %6664 = vmatpush3.msra.mxu1 %v7515_v16 }
 0x15d   :  { %6659 = vmatmul.mubr.msk.f32.vlgmr.msra.gmra.mxu0 %vm32_vm0, %v7540_v21  ;;  %6665 = vmatprep.subr.mxu1 %v7306_v28 }
 0x15e   :  { %6672 = vmatprep.subr.mxu0 %v7306_v28  ;;  %6666 = vmatpush3.msra.mxu1 %v7525_v18 }
 0x15f   :  { %6673 = vmatpush3.msra.mxu0 %v7550_v23  ;;  %6667 = vmatprep.subr.mxu1 %v7306_v28 }
 0x160   :  { %6674 = vmatprep.subr.mxu0 %v7306_v28  ;;  %6668 = vmatpush3.msra.mxu1 %v7536_v20 }
 0x161   :  { %6669 = vmatprep.mubr.msk.f32.mxu1 %vm7307_vm1, %v7306_v28  ;;  %6675 = vmatpush3.msra.mxu0 %v7562_v24 }
 0x162   :  { %6670 = vmatmul.mubr.msk.f32.vlgmr.msra.gmra.mxu1 %vm32_vm0, %v7564_v25  ;;  %6676 = vmatprep.subr.mxu0 %v7306_v28 }
 0x163   :  { %6683 = vmatprep.subr.mxu1 %v7306_v28  ;;  %6677 = vmatpush3.msra.mxu0 %v7574_v26 }
 0x164   :  { %6684 = vmatpush3.msra.mxu1 %v7550_v23  ;;  %6678 = vmatprep.subr.mxu0 %v7306_v28 }
 0x165   :  { %6685 = vmatprep.subr.mxu1 %v7306_v28  ;;  %6679 = vmatpush3.msra.mxu0 %v7584_v27 }
 0x166   :  { %6680 = vmatprep.mubr.msk.f32.mxu0 %vm7307_vm1, %v7306_v28  ;;  %6686 = vmatpush3.msra.mxu1 %v7562_v24 }
 0x167   :  { %6681 = vmatmul.mubr.msk.f32.vlgmr.msra.gmra.mxu0 %vm32_vm0, %v7540_v21  ;;  %6687 = vmatprep.subr.mxu1 %v7306_v28 }
 0x168   :  { %6694 = vmatprep.subr.mxu0 %v7306_v28  ;;  %6688 = vmatpush3.msra.mxu1 %v7574_v26 }
 0x169   :  { %6695 = vmatpush3.msra.mxu0 %v7596_v29  ;;  %6689 = vmatprep.subr.mxu1 %v7306_v28 }
 0x16a   :  { %6696 = vmatprep.subr.mxu0 %v7306_v28  ;;  %6690 = vmatpush3.msra.mxu1 %v7584_v27 }
 0x16b   :  { %6691 = vmatprep.mubr.msk.f32.mxu1 %vm7307_vm1, %v7306_v28  ;;  %6697 = vmatpush3.msra.mxu0 %v7608_v30 }
 0x16c   :  { %6692 = vmatmul.mubr.msk.f32.vlgmr.msra.gmra.mxu1 %vm32_vm0, %v7564_v25  ;;  %6698 = vmatprep.subr.mxu0 %v7306_v28 }
 0x16d   :  { %6705 = vmatprep.subr.mxu1 %v7306_v28  ;;  %6699 = vmatpush3.msra.mxu0 %v7618_v31 }
 0x16e   :  { %6706 = vmatpush3.msra.mxu1 %v7596_v29  ;;  %6700 = vmatprep.subr.mxu0 %v7306_v28 }
 0x16f   :  { %6707 = vmatprep.subr.mxu1 %v7306_v28  ;;  %6701 = vmatpush3.msra.mxu0 %v7628_v32 }
 0x170   :  { %6702 = vmatprep.mubr.msk.f32.mxu0 %vm7307_vm1, %v7306_v28  ;;  %6708 = vmatpush3.msra.mxu1 %v7608_v30 }
 0x171   :  { %6703 = vmatmul.mubr.msk.f32.vlgmr.msra.gmra.mxu0 %vm32_vm0, %v7540_v21  ;;  %6709 = vmatprep.subr.mxu1 %v7306_v28 }
 0x172   :  { %6716 = vmatprep.subr.mxu0 %v7306_v28  ;;  %6710 = vmatpush3.msra.mxu1 %v7618_v31 }
 0x173   :  { %6717 = vmatpush3.msra.mxu0 %v7640_v33  ;;  %6711 = vmatprep.subr.mxu1 %v7306_v28 }
 0x174   :  { %6718 = vmatprep.subr.mxu0 %v7306_v28  ;;  %6712 = vmatpush3.msra.mxu1 %v7628_v32 }
 0x175   :  { %6713 = vmatprep.mubr.msk.f32.mxu1 %vm7307_vm1, %v7306_v28  ;;  %6719 = vmatpush3.msra.mxu0 %v7652_v34 }
 0x176   :  { %6714 = vmatmul.mubr.msk.f32.vlgmr.msra.gmra.mxu1 %vm32_vm0, %v7564_v25  ;;  %6720 = vmatprep.subr.mxu0 %v7306_v28 }
 0x177   :  { %6727 = vmatprep.subr.mxu1 %v7306_v28  ;;  %6721 = vmatpush3.msra.mxu0 %v7662_v35 }
 0x178   :  { %6728 = vmatpush3.msra.mxu1 %v7640_v33  ;;  %6722 = vmatprep.subr.mxu0 %v7306_v28 }
 0x179   :  { %6729 = vmatprep.subr.mxu1 %v7306_v28  ;;  %6723 = vmatpush3.msra.mxu0 %v7672_v36 }
 0x17a   :  { %6724 = vmatprep.mubr.msk.f32.mxu0 %vm7307_vm1, %v7306_v28  ;;  %6730 = vmatpush3.msra.mxu1 %v7652_v34 }
 0x17b   :  { %6725 = vmatmul.mubr.msk.f32.vlgmr.msra.gmra.mxu0 %vm32_vm0, %v7540_v21  ;;  %6731 = vmatprep.subr.mxu1 %v7306_v28 }
 0x17c   :  { %6738 = vmatprep.subr.mxu0 %v7306_v28  ;;  %6732 = vmatpush3.msra.mxu1 %v7662_v35 }
 0x17d   :  { %6739 = vmatpush3.msra.mxu0 %v7502_v10  ;;  %6733 = vmatprep.subr.mxu1 %v7306_v28 }
 0x17e   :  { %6740 = vmatprep.subr.mxu0 %v7306_v28  ;;  %6734 = vmatpush3.msra.mxu1 %v7672_v36 }
 0x17f   :  { %6735 = vmatprep.mubr.msk.f32.mxu1 %vm7307_vm1, %v7306_v28  ;;  %6741 = vmatpush3.msra.mxu0 %v7515_v16 }
 0x180   :  { %6736 = vmatmul.mubr.msk.f32.vlgmr.msra.gmra.mxu1 %vm32_vm0, %v7564_v25  ;;  %6742 = vmatprep.subr.mxu0 %v7306_v28 }
 0x181   :  { %6749 = vmatprep.subr.mxu1 %v7306_v28  ;;  %6743 = vmatpush3.msra.mxu0 %v7525_v18 }
 0x182   :  { %6750 = vmatpush3.msra.mxu1 %v7502_v10  ;;  %6744 = vmatprep.subr.mxu0 %v7306_v28 }
 0x183   :  { %6751 = vmatprep.subr.mxu1 %v7306_v28  ;;  %6745 = vmatpush3.msra.mxu0 %v7536_v20 }
 0x184   :  { %6746 = vmatprep.mubr.msk.f32.mxu0 %vm7307_vm1, %v7306_v28  ;;  %6752 = vmatpush3.msra.mxu1 %v7515_v16 }
 0x185   :  { %6747 = vmatmul.mubr.msk.f32.vlgmr.msra.gmra.mxu0 %vm32_vm0, %v7416_v50  ;;  %6753 = vmatprep.subr.mxu1 %v7306_v28 }
 0x186   :  { %6760 = vmatprep.subr.mxu0 %v7306_v28  ;;  %6754 = vmatpush3.msra.mxu1 %v7525_v18 }
 0x187   :  { %6761 = vmatpush3.msra.mxu0 %v7550_v23  ;;  %6755 = vmatprep.subr.mxu1 %v7306_v28 }
 0x188   :  { %6762 = vmatprep.subr.mxu0 %v7306_v28  ;;  %6756 = vmatpush3.msra.mxu1 %v7536_v20 }
 0x189   :  { %6757 = vmatprep.mubr.msk.f32.mxu1 %vm7307_vm1, %v7306_v28  ;;  %6763 = vmatpush3.msra.mxu0 %v7562_v24 }
 0x18a   :  { %6758 = vmatmul.mubr.msk.f32.vlgmr.msra.gmra.mxu1 %vm32_vm0, %v7432_v57  ;;  %6764 = vmatprep.subr.mxu0 %v7306_v28 }
 0x18b   :  { %6771 = vmatprep.subr.mxu1 %v7306_v28  ;;  %6765 = vmatpush3.msra.mxu0 %v7574_v26 }
 0x18c   :  { %6772 = vmatpush3.msra.mxu1 %v7550_v23  ;;  %6766 = vmatprep.subr.mxu0 %v7306_v28 }
 0x18d   :  { %6773 = vmatprep.subr.mxu1 %v7306_v28  ;;  %6767 = vmatpush3.msra.mxu0 %v7584_v27 }
 0x18e   :  { %6768 = vmatprep.mubr.msk.f32.mxu0 %vm7307_vm1, %v7306_v28  ;;  %6774 = vmatpush3.msra.mxu1 %v7562_v24 }
 0x18f   :  { %6769 = vmatmul.mubr.msk.f32.vlgmr.msra.gmra.mxu0 %vm32_vm0, %v7416_v50  ;;  %6775 = vmatprep.subr.mxu1 %v7306_v28 }
 0x190   :  { %6782 = vmatprep.subr.mxu0 %v7306_v28  ;;  %6776 = vmatpush3.msra.mxu1 %v7574_v26 }
 0x191   :  { %6783 = vmatpush3.msra.mxu0 %v7596_v29  ;;  %6777 = vmatprep.subr.mxu1 %v7306_v28 }
 0x192   :  { %6784 = vmatprep.subr.mxu0 %v7306_v28  ;;  %6778 = vmatpush3.msra.mxu1 %v7584_v27 }
 0x193   :  { %6779 = vmatprep.mubr.msk.f32.mxu1 %vm7307_vm1, %v7306_v28  ;;  %6785 = vmatpush3.msra.mxu0 %v7608_v30 }
 0x194   :  { %6780 = vmatmul.mubr.msk.f32.vlgmr.msra.gmra.mxu1 %vm32_vm0, %v7432_v57  ;;  %6786 = vmatprep.subr.mxu0 %v7306_v28 }
 0x195   :  { %6793 = vmatprep.subr.mxu1 %v7306_v28  ;;  %6787 = vmatpush3.msra.mxu0 %v7618_v31 }
 0x196   :  { %6794 = vmatpush3.msra.mxu1 %v7596_v29  ;;  %6788 = vmatprep.subr.mxu0 %v7306_v28 }
 0x197   :  { %6795 = vmatprep.subr.mxu1 %v7306_v28  ;;  %6789 = vmatpush3.msra.mxu0 %v7628_v32 }
 0x198   :  { %6790 = vmatprep.mubr.msk.f32.mxu0 %vm7307_vm1, %v7306_v28  ;;  %6796 = vmatpush3.msra.mxu1 %v7608_v30 }
 0x199   :  { %6791 = vmatmul.mubr.msk.f32.vlgmr.msra.gmra.mxu0 %vm32_vm0, %v7416_v50  ;;  %6797 = vmatprep.subr.mxu1 %v7306_v28 }
 0x19a   :  { %6804 = vmatprep.subr.mxu0 %v7306_v28  ;;  %6798 = vmatpush3.msra.mxu1 %v7618_v31 }
 0x19b   :  { %6805 = vmatpush3.msra.mxu0 %v7640_v33  ;;  %6799 = vmatprep.subr.mxu1 %v7306_v28 }
 0x19c   :  { %6806 = vmatprep.subr.mxu0 %v7306_v28  ;;  %6800 = vmatpush3.msra.mxu1 %v7628_v32 }
 0x19d   :  { %6801 = vmatprep.mubr.msk.f32.mxu1 %vm7307_vm1, %v7306_v28  ;;  %6807 = vmatpush3.msra.mxu0 %v7652_v34 }
 0x19e   :  { %6802 = vmatmul.mubr.msk.f32.vlgmr.msra.gmra.mxu1 %vm32_vm0, %v7432_v57  ;;  %6808 = vmatprep.subr.mxu0 %v7306_v28 }
 0x19f   :  { %6815 = vmatprep.subr.mxu1 %v7306_v28  ;;  %6809 = vmatpush3.msra.mxu0 %v7662_v35 }
 0x1a0   :  { %6816 = vmatpush3.msra.mxu1 %v7640_v33  ;;  %6810 = vmatprep.subr.mxu0 %v7306_v28 }
 0x1a1   :  { %6817 = vmatprep.subr.mxu1 %v7306_v28  ;;  %6811 = vmatpush3.msra.mxu0 %v7672_v36 }
 0x1a2   :  { %6812 = vmatprep.mubr.msk.f32.mxu0 %vm7307_vm1, %v7306_v28  ;;  %6818 = vmatpush3.msra.mxu1 %v7652_v34 }
 0x1a3   :  { %6813 = vmatmul.mubr.msk.f32.vlgmr.msra.gmra.mxu0 %vm32_vm0, %v7416_v50  ;;  %6819 = vmatprep.subr.mxu1 %v7306_v28 }
 0x1a4   :  { %6826 = vmatprep.subr.mxu0 %v7306_v28  ;;  %6820 = vmatpush3.msra.mxu1 %v7662_v35 }
 0x1a5   :  { %6827 = vmatpush3.msra.mxu0 %v7780_v37  ;;  %6821 = vmatprep.subr.mxu1 %v7306_v28 }
 0x1a6   :  { %6828 = vmatprep.subr.mxu0 %v7306_v28  ;;  %6822 = vmatpush3.msra.mxu1 %v7672_v36 }
 0x1a7   :  { %6823 = vmatprep.mubr.msk.f32.mxu1 %vm7307_vm1, %v7306_v28  ;;  %6829 = vmatpush3.msra.mxu0 %v7792_v38 }
 0x1a8   :  { %6824 = vmatmul.mubr.msk.f32.vlgmr.msra.gmra.mxu1 %vm32_vm0, %v7432_v57  ;;  %6830 = vmatprep.subr.mxu0 %v7306_v28 }
 0x1a9   :  { %6837 = vmatprep.subr.mxu1 %v7306_v28  ;;  %6831 = vmatpush3.msra.mxu0 %v7802_v39 }
 0x1aa   :  { %6838 = vmatpush3.msra.mxu1 %v7780_v37  ;;  %6832 = vmatprep.subr.mxu0 %v7306_v28 }
 0x1ab   :  { %6839 = vmatprep.subr.mxu1 %v7306_v28  ;;  %6833 = vmatpush3.msra.mxu0 %v7812_v41 }
 0x1ac   :  { %6834 = vmatprep.mubr.msk.f32.mxu0 %vm7307_vm1, %v7306_v28  ;;  %6840 = vmatpush3.msra.mxu1 %v7792_v38 }
 0x1ad   :  { %6835 = vmatmul.mubr.msk.f32.vlgmr.msra.gmra.mxu0 %vm32_vm0, %v7540_v21  ;;  %6841 = vmatprep.subr.mxu1 %v7306_v28 }
 0x1ae   :  { %6848 = vmatprep.subr.mxu0 %v7306_v28  ;;  %6842 = vmatpush3.msra.mxu1 %v7802_v39 }
 0x1af   :  { %6849 = vmatpush3.msra.mxu0 %v7824_v42  ;;  %6843 = vmatprep.subr.mxu1 %v7306_v28 }
 0x1b0   :  { %6850 = vmatprep.subr.mxu0 %v7306_v28  ;;  %6844 = vmatpush3.msra.mxu1 %v7812_v41 }
 0x1b1   :  { %6845 = vmatprep.mubr.msk.f32.mxu1 %vm7307_vm1, %v7306_v28  ;;  %6851 = vmatpush3.msra.mxu0 %v7836_v43 }
 0x1b2   :  { %6846 = vmatmul.mubr.msk.f32.vlgmr.msra.gmra.mxu1 %vm32_vm0, %v7564_v25  ;;  %6852 = vmatprep.subr.mxu0 %v7306_v28 }
 0x1b3   :  { %6859 = vmatprep.subr.mxu1 %v7306_v28  ;;  %6853 = vmatpush3.msra.mxu0 %v7846_v44 }
 0x1b4   :  { %6860 = vmatpush3.msra.mxu1 %v7824_v42  ;;  %6854 = vmatprep.subr.mxu0 %v7306_v28 }
 0x1b5   :  { %6861 = vmatprep.subr.mxu1 %v7306_v28  ;;  %6855 = vmatpush3.msra.mxu0 %v7856_v45 }
 0x1b6   :  { %6856 = vmatprep.mubr.msk.f32.mxu0 %vm7307_vm1, %v7306_v28  ;;  %6862 = vmatpush3.msra.mxu1 %v7836_v43 }
 0x1b7   :  { %6857 = vmatmul.mubr.msk.f32.vlgmr.msra.gmra.mxu0 %vm32_vm0, %v7540_v21  ;;  %6863 = vmatprep.subr.mxu1 %v7306_v28 }
 0x1b8   :  { %6870 = vmatprep.subr.mxu0 %v7306_v28  ;;  %6864 = vmatpush3.msra.mxu1 %v7846_v44 }
 0x1b9   :  { %6871 = vmatpush3.msra.mxu0 %v7868_v46  ;;  %6865 = vmatprep.subr.mxu1 %v7306_v28 }
 0x1ba   :  { %6872 = vmatprep.subr.mxu0 %v7306_v28  ;;  %6866 = vmatpush3.msra.mxu1 %v7856_v45 }
 0x1bb   :  { %6867 = vmatprep.mubr.msk.f32.mxu1 %vm7307_vm1, %v7306_v28  ;;  %6873 = vmatpush3.msra.mxu0 %v7880_v47 }
 0x1bc   :  { %6868 = vmatmul.mubr.msk.f32.vlgmr.msra.gmra.mxu1 %vm32_vm0, %v7564_v25  ;;  %6874 = vmatprep.subr.mxu0 %v7306_v28 }
 0x1bd   :  { %6881 = vmatprep.subr.mxu1 %v7306_v28  ;;  %6875 = vmatpush3.msra.mxu0 %v7890_v48 }
 0x1be   :  { %6882 = vmatpush3.msra.mxu1 %v7868_v46  ;;  %6876 = vmatprep.subr.mxu0 %v7306_v28 }
 0x1bf   :  { %6883 = vmatprep.subr.mxu1 %v7306_v28  ;;  %6877 = vmatpush3.msra.mxu0 %v7900_v49 }
 0x1c0   :  { %6878 = vmatprep.mubr.msk.f32.mxu0 %vm7307_vm1, %v7306_v28  ;;  %6884 = vmatpush3.msra.mxu1 %v7880_v47 }
 0x1c1   :  { %6879 = vmatmul.mubr.msk.f32.vlgmr.msra.gmra.mxu0 %vm32_vm0, %v7540_v21  ;;  %6885 = vmatprep.subr.mxu1 %v7306_v28 }
 0x1c2   :  { %6892 = vmatprep.subr.mxu0 %v7306_v28  ;;  %6886 = vmatpush3.msra.mxu1 %v7890_v48 }
 0x1c3   :  { %6893 = vmatpush3.msra.mxu0 %v7912_v51  ;;  %6887 = vmatprep.subr.mxu1 %v7306_v28 }
 0x1c4   :  { %6894 = vmatprep.subr.mxu0 %v7306_v28  ;;  %6888 = vmatpush3.msra.mxu1 %v7900_v49 }
 0x1c5   :  { %6889 = vmatprep.mubr.msk.f32.mxu1 %vm7307_vm1, %v7306_v28  ;;  %6895 = vmatpush3.msra.mxu0 %v7924_v52 }
 0x1c6   :  { %6890 = vmatmul.mubr.msk.f32.vlgmr.msra.gmra.mxu1 %vm32_vm0, %v7564_v25  ;;  %6896 = vmatprep.subr.mxu0 %v7306_v28 }
 0x1c7   :  { %6903 = vmatprep.subr.mxu1 %v7306_v28  ;;  %6897 = vmatpush3.msra.mxu0 %v7934_v53 }
 0x1c8   :  { %6904 = vmatpush3.msra.mxu1 %v7912_v51  ;;  %6898 = vmatprep.subr.mxu0 %v7306_v28 }
 0x1c9   :  { %6905 = vmatprep.subr.mxu1 %v7306_v28  ;;  %6899 = vmatpush3.msra.mxu0 %v7944_v54 }
 0x1ca   :  { %6900 = vmatprep.mubr.msk.f32.mxu0 %vm7307_vm1, %v7306_v28  ;;  %6906 = vmatpush3.msra.mxu1 %v7924_v52 }
 0x1cb   :  { %6901 = vmatmul.mubr.msk.f32.vlgmr.msra.gmra.mxu0 %vm32_vm0, %v7540_v21  ;;  %6907 = vmatprep.subr.mxu1 %v7306_v28 }
 0x1cc   :  { %6914 = vmatprep.subr.mxu0 %v7306_v28  ;;  %6908 = vmatpush3.msra.mxu1 %v7934_v53 }
 0x1cd   :  { %6915 = vmatpush3.msra.mxu0 %v7780_v37  ;;  %6909 = vmatprep.subr.mxu1 %v7306_v28 }
 0x1ce   :  { %6916 = vmatprep.subr.mxu0 %v7306_v28  ;;  %6910 = vmatpush3.msra.mxu1 %v7944_v54 }
 0x1cf   :  { %6911 = vmatprep.mubr.msk.f32.mxu1 %vm7307_vm1, %v7306_v28  ;;  %6917 = vmatpush3.msra.mxu0 %v7792_v38 }
 0x1d0   :  { %6912 = vmatmul.mubr.msk.f32.vlgmr.msra.gmra.mxu1 %vm32_vm0, %v7564_v25  ;;  %6918 = vmatprep.subr.mxu0 %v7306_v28 }
 0x1d1   :  { %6925 = vmatprep.subr.mxu1 %v7306_v28  ;;  %6919 = vmatpush3.msra.mxu0 %v7802_v39 }
 0x1d2   :  { %6926 = vmatpush3.msra.mxu1 %v7780_v37  ;;  %6920 = vmatprep.subr.mxu0 %v7306_v28 }
 0x1d3   :  { %6927 = vmatprep.subr.mxu1 %v7306_v28  ;;  %6921 = vmatpush3.msra.mxu0 %v7812_v41 }
 0x1d4   :  { %6922 = vmatprep.mubr.msk.f32.mxu0 %vm7307_vm1, %v7306_v28  ;;  %6928 = vmatpush3.msra.mxu1 %v7792_v38 }
 0x1d5   :  { %6923 = vmatmul.mubr.msk.f32.vlgmr.msra.gmra.mxu0 %vm32_vm0, %v7416_v50  ;;  %6929 = vmatprep.subr.mxu1 %v7306_v28 }
 0x1d6   :  { %6936 = vmatprep.subr.mxu0 %v7306_v28  ;;  %6930 = vmatpush3.msra.mxu1 %v7802_v39 }
 0x1d7   :  { %6937 = vmatpush3.msra.mxu0 %v7824_v42  ;;  %6931 = vmatprep.subr.mxu1 %v7306_v28 }
 0x1d8   :  { %6938 = vmatprep.subr.mxu0 %v7306_v28  ;;  %6932 = vmatpush3.msra.mxu1 %v7812_v41 }
 0x1d9   :  { %6933 = vmatprep.mubr.msk.f32.mxu1 %vm7307_vm1, %v7306_v28  ;;  %6939 = vmatpush3.msra.mxu0 %v7836_v43 }
 0x1da   :  { %6934 = vmatmul.mubr.msk.f32.vlgmr.msra.gmra.mxu1 %vm32_vm0, %v7432_v57  ;;  %6940 = vmatprep.subr.mxu0 %v7306_v28 }
 0x1db   :  { %6947 = vmatprep.subr.mxu1 %v7306_v28  ;;  %6941 = vmatpush3.msra.mxu0 %v7846_v44 }
 0x1dc   :  { %6948 = vmatpush3.msra.mxu1 %v7824_v42  ;;  %6942 = vmatprep.subr.mxu0 %v7306_v28 }
 0x1dd   :  { %6949 = vmatprep.subr.mxu1 %v7306_v28  ;;  %6943 = vmatpush3.msra.mxu0 %v7856_v45 }
 0x1de   :  { %6944 = vmatprep.mubr.msk.f32.mxu0 %vm7307_vm1, %v7306_v28  ;;  %6950 = vmatpush3.msra.mxu1 %v7836_v43 }
 0x1df   :  { %6945 = vmatmul.mubr.msk.f32.vlgmr.msra.gmra.mxu0 %vm32_vm0, %v7416_v50  ;;  %6951 = vmatprep.subr.mxu1 %v7306_v28 }
 0x1e0   :  { %6958 = vmatprep.subr.mxu0 %v7306_v28  ;;  %6952 = vmatpush3.msra.mxu1 %v7846_v44 }
 0x1e1   :  { %6959 = vmatpush3.msra.mxu0 %v7868_v46  ;;  %6953 = vmatprep.subr.mxu1 %v7306_v28 }
 0x1e2   :  { %6960 = vmatprep.subr.mxu0 %v7306_v28  ;;  %6954 = vmatpush3.msra.mxu1 %v7856_v45 }
 0x1e3   :  { %6955 = vmatprep.mubr.msk.f32.mxu1 %vm7307_vm1, %v7306_v28  ;;  %6961 = vmatpush3.msra.mxu0 %v7880_v47 }
 0x1e4   :  { %6956 = vmatmul.mubr.msk.f32.vlgmr.msra.gmra.mxu1 %vm32_vm0, %v7432_v57  ;;  %6962 = vmatprep.subr.mxu0 %v7306_v28 }
 0x1e5   :  { %6969 = vmatprep.subr.mxu1 %v7306_v28  ;;  %6963 = vmatpush3.msra.mxu0 %v7890_v48 }
 0x1e6   :  { %6970 = vmatpush3.msra.mxu1 %v7868_v46  ;;  %6964 = vmatprep.subr.mxu0 %v7306_v28 }
 0x1e7   :  { %6971 = vmatprep.subr.mxu1 %v7306_v28  ;;  %6965 = vmatpush3.msra.mxu0 %v7900_v49 }
 0x1e8   :  { %6966 = vmatprep.mubr.msk.f32.mxu0 %vm7307_vm1, %v7306_v28  ;;  %6972 = vmatpush3.msra.mxu1 %v7880_v47 }
 0x1e9   :  { %6967 = vmatmul.mubr.msk.f32.vlgmr.msra.gmra.mxu0 %vm32_vm0, %v7416_v50  ;;  %6973 = vmatprep.subr.mxu1 %v7306_v28 }
 0x1ea   :  { %6980 = vmatprep.subr.mxu0 %v7306_v28  ;;  %6974 = vmatpush3.msra.mxu1 %v7890_v48 }
 0x1eb   :  { %6981 = vmatpush3.msra.mxu0 %v7912_v51  ;;  %6975 = vmatprep.subr.mxu1 %v7306_v28 }
 0x1ec   :  { %6982 = vmatprep.subr.mxu0 %v7306_v28  ;;  %6976 = vmatpush3.msra.mxu1 %v7900_v49 }
 0x1ed   :  { %6977 = vmatprep.mubr.msk.f32.mxu1 %vm7307_vm1, %v7306_v28  ;;  %6983 = vmatpush3.msra.mxu0 %v7924_v52 }
 0x1ee   :  { %6978 = vmatmul.mubr.msk.f32.vlgmr.msra.gmra.mxu1 %vm32_vm0, %v7432_v57  ;;  %6984 = vmatprep.subr.mxu0 %v7306_v28 }
 0x1ef   :  { %6991 = vmatprep.subr.mxu1 %v7306_v28  ;;  %6985 = vmatpush3.msra.mxu0 %v7934_v53 }
 0x1f0   :  { %6992 = vmatpush3.msra.mxu1 %v7912_v51  ;;  %6986 = vmatprep.subr.mxu0 %v7306_v28 }
 0x1f1   :  { %6993 = vmatprep.subr.mxu1 %v7306_v28  ;;  %6987 = vmatpush3.msra.mxu0 %v7944_v54 }
 0x1f2   :  { %6988 = vmatprep.mubr.msk.f32.mxu0 %vm7307_vm1, %v7306_v28  ;;  %6994 = vmatpush3.msra.mxu1 %v7924_v52 }
 0x1f3   :  { %6989 = vmatmul.mubr.msk.f32.vlgmr.msra.gmra.mxu0 %vm32_vm0, %v7416_v50  ;;  %6995 = vmatprep.subr.mxu1 %v7306_v28 }
 0x1f4   :  { %6999 = vmatprep.mubr.msk.f32.mxu1 %vm7307_vm1, %v7306_v28  ;;  %6996 = vmatpush3.msra.mxu1 %v7934_v53 }
 0x1f5   :  { %7002 = vmatprep.subr.mxu0 %v7306_v28  ;;  %6997 = vmatprep.subr.mxu1 %v7306_v28 }
 0x1f6   :  { %7004 = vmatprep.mubr.msk.f32.mxu0 %vm7307_vm1, %v7306_v28  ;;  %6998 = vmatpush3.msra.mxu1 %v7944_v54 }
 0x1f7   :  { %v235_v55 = vpop.f32.mrf.mxu0  ;;  %7000 = vmatmul.mubr.msk.f32.vlgmr.msra.gmra.mxu1 %vm32_vm0, %v7432_v57  ;;  %7007 = vmatprep.subr.mxu1 %v7306_v28 }
 0x1f8   :  { %7009 = vmatprep.mubr.msk.f32.mxu1 %vm7307_vm1, %v7306_v28  ;;  %v732_v7 = vmul.f32 0.25, %v235_v55 }
 0x1f9   :  { %v6572_v50 = vpop.f32.mrf.mxu0 }
 0x1fb   :  { %v308_v56 = vpop.f32.mrf.mxu1 }
 0x1fc   :  { %v733_v10 = vmul.f32 0.25, %v308_v56 }
 0x1fd   :  { %v6583_v58 = vpop.f32.mrf.mxu1 }
 0x1ff   :  { %v378_v59 = vpop.f32.mrf.mxu0 }
 0x200   :  { %v734_v14 = vmul.f32 0.25, %v378_v59 }
 0x201   :  { %v6594_v60 = vpop.f32.mrf.mxu0 }
 0x204   :  { %v448_v61 = vpop.f32.mrf.mxu1 }
 0x205   :  { %v735_v13 = vmul.f32 0.25, %v448_v61 }
 0x206   :  { %v6605_v62 = vpop.f32.mrf.mxu1 }
 0x209   :  { %v518_v63 = vpop.f32.mrf.mxu0 }
 0x20a   :  { %v736_v19 = vmul.f32 0.25, %v518_v63 }
 0x20b   :  { %v6616_v0 = vpop.f32.mrf.mxu0 }
 0x20e   :  { %v588_v1 = vpop.f32.mrf.mxu1 }
 0x20f   :  { %v737_v22 = vmul.f32 0.25, %v588_v1 }
 0x210   :  { %v6627_v2 = vpop.f32.mrf.mxu1 }
 0x213   :  { %v658_v3 = vpop.f32.mrf.mxu0 }
 0x214   :  { %v738_v25 = vmul.f32 0.25, %v658_v3 }
 0x215   :  { %v6638_v4 = vpop.f32.mrf.mxu0 }
 0x218   :  { %v728_v5 = vpop.f32.mrf.mxu1 }
 0x219   :  { %v739_v29 = vmul.f32 0.25, %v728_v5 }
 0x21a   :  { %v6649_v57 = vpop.f32.mrf.mxu1 }
 0x21d   :  { %v809_v6 = vpop.f32.mrf.mxu0 }
 0x21e   :  { %7003 = vmatpush3.xpose.msk.msra.mxu0 %vm2986_vm2, %v809_v6 }
 0x21f   :  { %v6660_v8 = vpop.f32.mrf.mxu0  ;;  %7012 = vmatprep.subr.mxu0 %v7306_v28 }
 0x221   :  { %7005 = vmatmul.mubr.msk.f32.vlgmr.msra.gmra.mxu0 %vm2986_vm2, %v732_v7 }
 0x222   :  { %v882_v9 = vpop.f32.mrf.mxu1  ;;  %7014 = vmatprep.mubr.msk.f32.mxu0 %vm7307_vm1, %v7306_v28 }
 0x223   :  { %7008 = vmatpush3.xpose.msk.msra.mxu1 %vm2986_vm2, %v882_v9 }
 0x224   :  { %v6671_v11 = vpop.f32.mrf.mxu1  ;;  %7017 = vmatprep.subr.mxu1 %v7306_v28 }
 0x226   :  { %7010 = vmatmul.mubr.msk.f32.vlgmr.msra.gmra.mxu1 %vm2986_vm2, %v733_v10 }
 0x227   :  { %v952_v12 = vpop.f32.mrf.mxu0  ;;  %7019 = vmatprep.mubr.msk.f32.mxu1 %vm7307_vm1, %v7306_v28 }
 0x228   :  { %7013 = vmatpush3.xpose.msk.msra.mxu0 %vm2986_vm2, %v952_v12 }
 0x229   :  { %v6682_v15 = vpop.f32.mrf.mxu0  ;;  %7022 = vmatprep.subr.mxu0 %v7306_v28 }
 0x22b   :  { %7015 = vmatmul.mubr.msk.f32.vlgmr.msra.gmra.mxu0 %vm2986_vm2, %v734_v14 }
 0x22c   :  { %v1022_v16 = vpop.f32.mrf.mxu1  ;;  %7024 = vmatprep.mubr.msk.f32.mxu0 %vm7307_vm1, %v7306_v28 }
 0x22d   :  { %7018 = vmatpush3.xpose.msk.msra.mxu1 %vm2986_vm2, %v1022_v16 }
 0x22e   :  { %v6693_v17 = vpop.f32.mrf.mxu1  ;;  %7027 = vmatprep.subr.mxu1 %v7306_v28 }
 0x230   :  { %7020 = vmatmul.mubr.msk.f32.vlgmr.msra.gmra.mxu1 %vm2986_vm2, %v735_v13 }
 0x231   :  { %v1092_v18 = vpop.f32.mrf.mxu0  ;;  %7029 = vmatprep.mubr.msk.f32.mxu1 %vm7307_vm1, %v7306_v28 }
 0x232   :  { %7023 = vmatpush3.xpose.msk.msra.mxu0 %vm2986_vm2, %v1092_v18 }
 0x233   :  { %v6704_v20 = vpop.f32.mrf.mxu0  ;;  %7032 = vmatprep.subr.mxu0 %v7306_v28 }
 0x235   :  { %7025 = vmatmul.mubr.msk.f32.vlgmr.msra.gmra.mxu0 %vm2986_vm2, %v736_v19 }
 0x236   :  { %v1162_v21 = vpop.f32.mrf.mxu1  ;;  %7034 = vmatprep.mubr.msk.f32.mxu0 %vm7307_vm1, %v7306_v28 }
 0x237   :  { %7028 = vmatpush3.xpose.msk.msra.mxu1 %vm2986_vm2, %v1162_v21 }
 0x238   :  { %v6715_v23 = vpop.f32.mrf.mxu1  ;;  %7037 = vmatprep.subr.mxu1 %v7306_v28 }
 0x23a   :  { %7030 = vmatmul.mubr.msk.f32.vlgmr.msra.gmra.mxu1 %vm2986_vm2, %v737_v22 }
 0x23b   :  { %v1232_v24 = vpop.f32.mrf.mxu0  ;;  %7039 = vmatprep.mubr.msk.f32.mxu1 %vm7307_vm1, %v7306_v28 }
 0x23c   :  { %7033 = vmatpush3.xpose.msk.msra.mxu0 %vm2986_vm2, %v1232_v24 }
 0x23d   :  { %v6726_v26 = vpop.f32.mrf.mxu0  ;;  %7042 = vmatprep.subr.mxu0 %v7306_v28 }
 0x23f   :  { %7035 = vmatmul.mubr.msk.f32.vlgmr.msra.gmra.mxu0 %vm2986_vm2, %v738_v25 }
 0x240   :  { %v1302_v27 = vpop.f32.mrf.mxu1  ;;  %7044 = vmatprep.mubr.msk.f32.mxu0 %vm7307_vm1, %v7306_v28 }
 0x241   :  { %7038 = vmatpush3.xpose.msk.msra.mxu1 %vm2986_vm2, %v1302_v27 }
 0x242   :  { %v6737_v30 = vpop.f32.mrf.mxu1  ;;  %7047 = vmatprep.subr.mxu1 %v7306_v28 }
 0x244   :  { %7040 = vmatmul.mubr.msk.f32.vlgmr.msra.gmra.mxu1 %vm2986_vm2, %v739_v29 }
 0x245   :  { %v1372_v31 = vpop.f32.mrf.mxu0  ;;  %7049 = vmatprep.mubr.msk.f32.mxu1 %vm7307_vm1, %v7306_v28 }
 0x246   :  { %7043 = vmatpush3.xpose.msk.msra.mxu0 %vm2986_vm2, %v1372_v31 }
 0x247   :  { %v6748_v32 = vpop.f32.mrf.mxu0  ;;  %7052 = vmatprep.subr.mxu0 %v7306_v28 }
 0x249   :  { %7045 = vmatmul.mubr.msk.f32.vlgmr.msra.gmra.mxu0 %vm2986_vm2, %v732_v7 }
 0x24a   :  { %v1442_v33 = vpop.f32.mrf.mxu1  ;;  %7054 = vmatprep.mubr.msk.f32.mxu0 %vm7307_vm1, %v7306_v28 }
 0x24b   :  { %7048 = vmatpush3.xpose.msk.msra.mxu1 %vm2986_vm2, %v1442_v33 }
 0x24c   :  { %v6759_v34 = vpop.f32.mrf.mxu1  ;;  %7057 = vmatprep.subr.mxu1 %v7306_v28 }
 0x24e   :  { %7050 = vmatmul.mubr.msk.f32.vlgmr.msra.gmra.mxu1 %vm2986_vm2, %v733_v10 }
 0x24f   :  { %v1512_v35 = vpop.f32.mrf.mxu0  ;;  %7059 = vmatprep.mubr.msk.f32.mxu1 %vm7307_vm1, %v7306_v28 }
 0x250   :  { %7053 = vmatpush3.xpose.msk.msra.mxu0 %vm2986_vm2, %v1512_v35 }
 0x251   :  { %v6770_v36 = vpop.f32.mrf.mxu0  ;;  %7062 = vmatprep.subr.mxu0 %v7306_v28 }
 0x253   :  { %7055 = vmatmul.mubr.msk.f32.vlgmr.msra.gmra.mxu0 %vm2986_vm2, %v734_v14 }
 0x254   :  { %v1582_v37 = vpop.f32.mrf.mxu1  ;;  %7064 = vmatprep.mubr.msk.f32.mxu0 %vm7307_vm1, %v7306_v28 }
 0x255   :  { %7058 = vmatpush3.xpose.msk.msra.mxu1 %vm2986_vm2, %v1582_v37 }
 0x256   :  { %v6781_v38 = vpop.f32.mrf.mxu1  ;;  %7067 = vmatprep.subr.mxu1 %v7306_v28 }
 0x258   :  { %7060 = vmatmul.mubr.msk.f32.vlgmr.msra.gmra.mxu1 %vm2986_vm2, %v735_v13 }
 0x259   :  { %v1652_v39 = vpop.f32.mrf.mxu0  ;;  %7069 = vmatprep.mubr.msk.f32.mxu1 %vm7307_vm1, %v7306_v28 }
 0x25a   :  { %7063 = vmatpush3.xpose.msk.msra.mxu0 %vm2986_vm2, %v1652_v39 }
 0x25b   :  { %v6792_v41 = vpop.f32.mrf.mxu0  ;;  %7072 = vmatprep.subr.mxu0 %v7306_v28 }
 0x25d   :  { %7065 = vmatmul.mubr.msk.f32.vlgmr.msra.gmra.mxu0 %vm2986_vm2, %v736_v19 }
 0x25e   :  { %v1722_v42 = vpop.f32.mrf.mxu1  ;;  %7074 = vmatprep.mubr.msk.f32.mxu0 %vm7307_vm1, %v7306_v28 }
 0x25f   :  { %7068 = vmatpush3.xpose.msk.msra.mxu1 %vm2986_vm2, %v1722_v42 }
 0x260   :  { %v6803_v43 = vpop.f32.mrf.mxu1  ;;  %7077 = vmatprep.subr.mxu1 %v7306_v28 }
 0x262   :  { %7070 = vmatmul.mubr.msk.f32.vlgmr.msra.gmra.mxu1 %vm2986_vm2, %v737_v22 }
 0x263   :  { %v1792_v44 = vpop.f32.mrf.mxu0  ;;  %7079 = vmatprep.mubr.msk.f32.mxu1 %vm7307_vm1, %v7306_v28 }
 0x264   :  { %7073 = vmatpush3.xpose.msk.msra.mxu0 %vm2986_vm2, %v1792_v44 }
 0x265   :  { %v6814_v45 = vpop.f32.mrf.mxu0  ;;  %7082 = vmatprep.subr.mxu0 %v7306_v28 }
 0x267   :  { %7075 = vmatmul.mubr.msk.f32.vlgmr.msra.gmra.mxu0 %vm2986_vm2, %v738_v25 }
 0x268   :  { %v1862_v46 = vpop.f32.mrf.mxu1  ;;  %7084 = vmatprep.mubr.msk.f32.mxu0 %vm7307_vm1, %v7306_v28 }
 0x269   :  { %7078 = vmatpush3.xpose.msk.msra.mxu1 %vm2986_vm2, %v1862_v46 }
 0x26a   :  { %v6825_v47 = vpop.f32.mrf.mxu1  ;;  %7087 = vmatprep.subr.mxu1 %v7306_v28 }
 0x26c   :  { %7080 = vmatmul.mubr.msk.f32.vlgmr.msra.gmra.mxu1 %vm2986_vm2, %v739_v29 }
 0x26d   :  { %v8144_v48 = vpop.f32.mrf.mxu0  ;;  %7089 = vmatprep.mubr.msk.f32.mxu1 %vm7307_vm1, %v7306_v28 }
 0x26f   :  { %v6836_v49 = vpop.f32.mrf.mxu0 }
 0x272   :  { %v8148_v51 = vpop.f32.mrf.mxu1 }
 0x274   :  { %v6847_v52 = vpop.f32.mrf.mxu1 }
 0x277   :  { %v8150_v53 = vpop.f32.mrf.mxu0 }
 0x279   :  { %v6858_v54 = vpop.f32.mrf.mxu0 }
 0x27c   :  { %v8152_v55 = vpop.f32.mrf.mxu1 }
 0x27e   :  { %v6869_v50 = vpop.f32.mrf.mxu1 }
 0x281   :  { %v8154_v56 = vpop.f32.mrf.mxu0 }
 0x283   :  { %v6880_v58 = vpop.f32.mrf.mxu0 }
 0x286   :  { %v8156_v59 = vpop.f32.mrf.mxu1 }
 0x288   :  { %v6891_v60 = vpop.f32.mrf.mxu1 }
 0x28b   :  { %v8158_v61 = vpop.f32.mrf.mxu0 }
 0x28d   :  { %v6902_v62 = vpop.f32.mrf.mxu0 }
 0x290   :  { %v8160_v63 = vpop.f32.mrf.mxu1 }
 0x292   :  { %v6913_v0 = vpop.f32.mrf.mxu1 }
 0x295   :  { %v2492_v1 = vpop.f32.mrf.mxu0 }
 0x296   :  { %7083 = vmatpush3.msra.mxu0 %v2492_v1 }
 0x297   :  { %v6924_v2 = vpop.f32.mrf.mxu0  ;;  %7092 = vmatprep.subr.mxu0 %v7306_v28 }
 0x29a   :  { %v2562_v3 = vpop.f32.mrf.mxu1 }
 0x29b   :  { %7088 = vmatpush3.msra.mxu1 %v2562_v3 }
 0x29c   :  { %v6935_v4 = vpop.f32.mrf.mxu1  ;;  %7097 = vmatprep.subr.mxu1 %v7306_v28 }
 0x29f   :  { %v8164_v5 = vpop.f32.mrf.mxu0 }
 0x2a1   :  { %v6946_v57 = vpop.f32.mrf.mxu0 }
 0x2a4   :  { %v8166_v6 = vpop.f32.mrf.mxu1 }
 0x2a6   :  { %v6957_v7 = vpop.f32.mrf.mxu1 }
 0x2a9   :  { %v8168_v8 = vpop.f32.mrf.mxu0 }
 0x2ab   :  { %v6968_v9 = vpop.f32.mrf.mxu0 }
 0x2ae   :  { %v8170_v10 = vpop.f32.mrf.mxu1 }
 0x2b0   :  { %v6979_v11 = vpop.f32.mrf.mxu1 }
 0x2b3   :  { %v8172_v12 = vpop.f32.mrf.mxu0 }
 0x2b5   :  { %v6990_v14 = vpop.f32.mrf.mxu0 }
 0x2b7   :  { %v8174_v15 = vpop.f32.mrf.mxu1 }
 0x2b9   :  { %v7001_v16 = vpop.f32.mrf.mxu1 }
 0x2e1   :  { %v8176_v13 = vpop.f32.mrf.mxu0 }
 0x2e2   :  { %v4180_v17 = vsel %vm4179_vm3, %v8176_v13, -inf }
 0x2e3   :  { %4181 = vmax.xlane.f32.xlu0 %v4180_v17  ;;  %v7006_v18 = vpop.f32.mrf.mxu0 }
 0x2e6   :  { %v8180_v19 = vpop.f32.mrf.mxu1 }
 0x2e7   :  { %v4183_v20 = vsel %vm4179_vm3, %v8180_v19, -inf }
 0x2e8   :  { %4184 = vmax.xlane.f32.xlu1 %v4183_v20  ;;  %v7011_v21 = vpop.f32.mrf.mxu1 }
 0x2eb   :  { %v8184_v22 = vpop.f32.mrf.mxu0 }
 0x2ec   :  { %v4186_v23 = vsel %vm4179_vm3, %v8184_v22, -inf }
 0x2ed   :  { %4187 = vmax.xlane.f32.xlu0 %v4186_v23  ;;  %v7016_v24 = vpop.f32.mrf.mxu0 }
 0x2f0   :  { %v8188_v25 = vpop.f32.mrf.mxu1 }
 0x2f1   :  { %v4189_v26 = vsel %vm4179_vm3, %v8188_v25, -inf }
 0x2f2   :  { %4190 = vmax.xlane.f32.xlu1 %v4189_v26  ;;  %v7021_v27 = vpop.f32.mrf.mxu1 }
 0x2f5   :  { %v8192_v29 = vpop.f32.mrf.mxu0 }
 0x2f6   :  { %v4192_v30 = vsel %vm4179_vm3, %v8192_v29, -inf }
 0x2f7   :  { %4193 = vmax.xlane.f32.xlu0 %v4192_v30  ;;  %v7026_v31 = vpop.f32.mrf.mxu0 }
 0x2fa   :  { %v8196_v32 = vpop.f32.mrf.mxu1 }
 0x2fb   :  { %v4195_v33 = vsel %vm4179_vm3, %v8196_v32, -inf }
 0x2fc   :  { %4196 = vmax.xlane.f32.xlu1 %v4195_v33  ;;  %v7031_v34 = vpop.f32.mrf.mxu1 }
 0x2ff   :  { %v8200_v35 = vpop.f32.mrf.mxu0 }
 0x300   :  { %v4198_v36 = vsel %vm4179_vm3, %v8200_v35, -inf }
 0x301   :  { %4199 = vmax.xlane.f32.xlu0 %v4198_v36  ;;  %v7036_v37 = vpop.f32.mrf.mxu0 }
 0x304   :  { %v8204_v38 = vpop.f32.mrf.mxu1 }
 0x305   :  { %v4201_v39 = vsel %vm4179_vm3, %v8204_v38, -inf }
 0x306   :  { %4202 = vmax.xlane.f32.xlu1 %v4201_v39  ;;  %v7041_v41 = vpop.f32.mrf.mxu1 }
 0x309   :  { %v3664_v42 = vpop.f32.mrf.mxu0 }
 0x30a   :  { %v4204_v43 = vsel %vm4179_vm3, %v3664_v42, -inf }
 0x30b   :  { %4205 = vmax.xlane.f32.xlu0 %v4204_v43  ;;  %v7046_v44 = vpop.f32.mrf.mxu0 }
 0x30e   :  { %v3737_v45 = vpop.f32.mrf.mxu1 }
 0x30f   :  { %v4207_v46 = vsel %vm4179_vm3, %v3737_v45, -inf }
 0x310   :  { %4208 = vmax.xlane.f32.xlu1 %v4207_v46  ;;  %v7051_v47 = vpop.f32.mrf.mxu1 }
 0x313   :  { %v3810_v49 = vpop.f32.mrf.mxu0 }
 0x314   :  { %v4210_v52 = vsel %vm4179_vm3, %v3810_v49, -inf }
 0x315   :  { %4211 = vmax.xlane.f32.xlu0 %v4210_v52  ;;  %v7056_v54 = vpop.f32.mrf.mxu0 }
 0x318   :  { %v3883_v50 = vpop.f32.mrf.mxu1 }
 0x319   :  { %v4213_v58 = vsel %vm4179_vm3, %v3883_v50, -inf }
 0x31a   :  { %4214 = vmax.xlane.f32.xlu1 %v4213_v58  ;;  %v7061_v60 = vpop.f32.mrf.mxu1 }
 0x31d   :  { %v8212_v62 = vpop.f32.mrf.mxu0 }
 0x31e   :  { %v4216_v0 = vsel %vm4179_vm3, %v8212_v62, -inf }
 0x31f   :  { %4217 = vmax.xlane.f32.xlu0 %v4216_v0  ;;  %v7066_v1 = vpop.f32.mrf.mxu0 }
 0x322   :  { %v8216_v2 = vpop.f32.mrf.mxu1 }
 0x323   :  { %v4219_v3 = vsel %vm4179_vm3, %v8216_v2, -inf }
 0x324   :  { %4220 = vmax.xlane.f32.xlu1 %v4219_v3  ;;  %v7071_v4 = vpop.f32.mrf.mxu1 }
 0x327   :  { %v8220_v57 = vpop.f32.mrf.mxu0 }
 0x328   :  { %v4222_v7 = vsel %vm4179_vm3, %v8220_v57, -inf }
 0x329   :  { %4223 = vmax.xlane.f32.xlu0 %v4222_v7  ;;  %v7076_v9 = vpop.f32.mrf.mxu0 }
 0x32c   :  { %v8224_v11 = vpop.f32.mrf.mxu1 }
 0x32d   :  { %v4225_v14 = vsel %vm4179_vm3, %v8224_v11, -inf }
 0x32e   :  { %4226 = vmax.xlane.f32.xlu1 %v4225_v14  ;;  %v7081_v16 = vpop.f32.mrf.mxu1 }
 0x36c   :  { %v4182_v17 = vpop.xlane.xlu0 %4181 }
 0x371   :  { %v4185_v20 = vpop.xlane.xlu1 %4184 }
 0x376   :  { %v4188_v18 = vpop.xlane.xlu0 %4187 }
 0x37b   :  { %v4191_v23 = vpop.xlane.xlu1 %4190 }
 0x380   :  { %v4194_v21 = vpop.xlane.xlu0 %4193 }
 0x385   :  { %v4197_v26 = vpop.xlane.xlu1 %4196 }
 0x38a   :  { %v8228_v24 = vpop.xlane.xlu0 %4199 }
 0x38f   :  { %v8230_v30 = vpop.xlane.xlu1 %4202 }
 0x394   :  { %v4206_v27 = vpop.xlane.xlu0 %4205 }
 0x395   :  { %v4228_v31 = vmax.f32 %v4182_v17, %v4206_v27 }
 0x397   :  { %v4236_v33 = vsub.f32 %v8176_v13, %v4228_v31  ;;  %v4260_v34 = vsub.f32 %v3664_v42, %v4228_v31 }
 0x399   :  { %v4244_v36 = vmul.f32 1.442695, %v4236_v33  ;;  %v4268_v37 = vmul.f32 1.442695, %v4260_v34  ;;  %v4209_v39 = vpop.xlane.xlu1 %4208 }
 0x39a   :  { %v4229_v41 = vmax.f32 %v4185_v20, %v4209_v39 }
 0x39b   :  { %7231 = vpow2.f32 %v4244_v36 }
 0x39c   :  { %7233 = vpow2.f32 %v4268_v37  ;;  %v4237_v43 = vsub.f32 %v8180_v19, %v4229_v41  ;;  %v4261_v44 = vsub.f32 %v3737_v45, %v4229_v41 }
 0x39e   :  { %v4246_v46 = vmul.f32 1.442695, %v4237_v43  ;;  %v4270_v47 = vmul.f32 1.442695, %v4261_v44  ;;  %v4212_v52 = vpop.xlane.xlu0 %4211 }
 0x39f   :  { %v4230_v54 = vmax.f32 %v4188_v18, %v4212_v52 }
 0x3a0   :  { %7235 = vpow2.f32 %v4246_v46 }
 0x3a1   :  { %7237 = vpow2.f32 %v4270_v47  ;;  %v4238_v58 = vsub.f32 %v8184_v22, %v4230_v54  ;;  %v4262_v60 = vsub.f32 %v3810_v49, %v4230_v54 }
 0x3a3   :  { %v4248_v13 = vmul.f32 1.442695, %v4238_v58  ;;  %v4272_v42 = vmul.f32 1.442695, %v4262_v60  ;;  %v4215_v0 = vpop.xlane.xlu1 %4214 }
 0x3a4   :  { %v4231_v1 = vmax.f32 %v4191_v23, %v4215_v0 }
 0x3a5   :  { %7239 = vpow2.f32 %v4248_v13 }
 0x3a6   :  { %7241 = vpow2.f32 %v4272_v42  ;;  %v4239_v3 = vsub.f32 %v8188_v25, %v4231_v1  ;;  %v4263_v4 = vsub.f32 %v3883_v50, %v4231_v1 }
 0x3a8   :  { %v8236_v19 = vpop.eup %7231  ;;  %v4250_v45 = vmul.f32 1.442695, %v4239_v3  ;;  %v4274_v7 = vmul.f32 1.442695, %v4263_v4  ;;  %v4218_v9 = vpop.xlane.xlu0 %4217 }
 0x3a9   :  { %v7234_v14 = vpop.eup %7233  ;;  %v4232_v16 = vmax.f32 %v4194_v21, %v4218_v9  ;;  %v4284_v22 = vsel %vm4179_vm3, %v8236_v19, 0.0 }
 0x3aa   :  { %7243 = vpow2.f32 %v4250_v45  ;;  %7085 = vmatmul.mubr.msk.f32.vlgmr.msra.gmra.mxu0 %vm4179_vm3, %v7234_v14  ;;  %4285 = vadd.xlane.f32.xlu0 %v4284_v22  ;;  %v4308_v21 = vsel %vm4179_vm3, %v7234_v14, 0.0 }
 0x3ab   :  { %7245 = vpow2.f32 %v4274_v7  ;;  %v4240_v49 = vsub.f32 %v8192_v29, %v4232_v16  ;;  %v4264_v25 = vsub.f32 %v8212_v62, %v4232_v16  ;;  %7093 = vmatpush3.msra.mxu0 %v8164_v5  ;;  %7094 = vmatprep.mubr.msk.f32.mxu0 %vm7307_vm1, %v7306_v28 }
 0x3ac   :  { %7102 = vmatprep.subr.mxu0 %v7306_v28 }
 0x3ad   :  { %v8247_v50 = vpop.eup %7235  ;;  %v4252_v17 = vmul.f32 1.442695, %v4240_v49  ;;  %v4276_v18 = vmul.f32 1.442695, %v4264_v25  ;;  %v4221_v20 = vpop.xlane.xlu1 %4220 }
 0x3ae   :  { %v7238_v23 = vpop.eup %7237  ;;  %v4233_v27 = vmax.f32 %v4197_v26, %v4221_v20  ;;  %v4287_v29 = vsel %vm4179_vm3, %v8247_v50, 0.0  ;;  %4309 = vadd.xlane.f32.xlu0 %v4308_v21 }
 0x3af   :  { %7247 = vpow2.f32 %v4252_v17  ;;  %7090 = vmatmul.mubr.msk.f32.vlgmr.msra.gmra.mxu1 %vm4179_vm3, %v7238_v23  ;;  %4288 = vadd.xlane.f32.xlu1 %v4287_v29  ;;  %v4311_v36 = vsel %vm4179_vm3, %v7238_v23, 0.0 }
 0x3b0   :  { %7249 = vpow2.f32 %v4276_v18  ;;  %v4241_v5 = vsub.f32 %v8196_v32, %v4233_v27  ;;  %v4265_v62 = vsub.f32 %v8216_v2, %v4233_v27  ;;  %7098 = vmatpush3.msra.mxu1 %v8166_v6  ;;  %7099 = vmatprep.mubr.msk.f32.mxu1 %vm7307_vm1, %v7306_v28 }
 0x3b1   :  { %7107 = vmatprep.subr.mxu1 %v7306_v28 }
 0x3b2   :  { %v8259_v26 = vpop.eup %7239  ;;  %v4254_v31 = vmul.f32 1.442695, %v4241_v5  ;;  %v4278_v33 = vmul.f32 1.442695, %v4265_v62  ;;  %v4224_v34 = vpop.xlane.xlu0 %4223 }
 0x3b3   :  { %v7242_v37 = vpop.eup %7241  ;;  %v4234_v39 = vmax.f32 %v8228_v24, %v4224_v34  ;;  %4312 = vadd.xlane.f32.xlu1 %v4311_v36  ;;  %v4290_v32 = vsel %vm4179_vm3, %v8259_v26, 0.0 }
 0x3b4   :  { %7251 = vpow2.f32 %v4254_v31  ;;  %7095 = vmatmul.mubr.msk.f32.vlgmr.msra.gmra.mxu0 %vm4179_vm3, %v7242_v37  ;;  %4291 = vadd.xlane.f32.xlu0 %v4290_v32  ;;  %v4314_v46 = vsel %vm4179_vm3, %v7242_v37, 0.0 }
 0x3b5   :  { %7253 = vpow2.f32 %v4278_v33  ;;  %v4242_v6 = vsub.f32 %v8200_v35, %v4234_v39  ;;  %v4266_v2 = vsub.f32 %v8220_v57, %v4234_v39  ;;  %7103 = vmatpush3.msra.mxu0 %v8168_v8  ;;  %7104 = vmatprep.mubr.msk.f32.mxu0 %vm7307_vm1, %v7306_v28 }
 0x3b6   :  { %7112 = vmatprep.subr.mxu0 %v7306_v28 }
 0x3b7   :  { %v8272_v24 = vpop.eup %7243  ;;  %v4256_v41 = vmul.f32 1.442695, %v4242_v6  ;;  %v4280_v43 = vmul.f32 1.442695, %v4266_v2  ;;  %v4227_v44 = vpop.xlane.xlu1 %4226 }
 0x3b8   :  { %v7246_v47 = vpop.eup %7245  ;;  %v4235_v52 = vmax.f32 %v8230_v30, %v4227_v44  ;;  %v4293_v35 = vsel %vm4179_vm3, %v8272_v24, 0.0  ;;  %4315 = vadd.xlane.f32.xlu0 %v4314_v46 }
 0x3b9   :  { %7255 = vpow2.f32 %v4256_v41  ;;  %7100 = vmatmul.mubr.msk.f32.vlgmr.msra.gmra.mxu1 %vm4179_vm3, %v7246_v47  ;;  %4294 = vadd.xlane.f32.xlu1 %v4293_v35  ;;  %v4317_v60 = vsel %vm4179_vm3, %v7246_v47, 0.0 }
 0x3ba   :  { %7257 = vpow2.f32 %v4280_v43  ;;  %v4243_v8 = vsub.f32 %v8204_v38, %v4235_v52  ;;  %v4267_v57 = vsub.f32 %v8224_v11, %v4235_v52  ;;  %7108 = vmatpush3.msra.mxu1 %v8170_v10  ;;  %7109 = vmatprep.mubr.msk.f32.mxu1 %vm7307_vm1, %v7306_v28 }
 0x3bb   :  { %7117 = vmatprep.subr.mxu1 %v7306_v28 }
 0x3bc   :  { %v7248_v30 = vpop.eup %7247  ;;  %v4258_v54 = vmul.f32 1.442695, %v4243_v8  ;;  %v4282_v58 = vmul.f32 1.442695, %v4267_v57 }
 0x3bd   :  { %v7250_v13 = vpop.eup %7249  ;;  %4318 = vadd.xlane.f32.xlu1 %v4317_v60  ;;  %v4296_v42 = vsel %vm4179_vm3, %v7248_v30, 0.0  ;;  %v161_v60 = vld [vmem:[%s8448_s5 + $0x18] sm:$0xff] }
 0x3be   :  { %7259 = vpow2.f32 %v4258_v54  ;;  %7105 = vmatmul.mubr.msk.f32.vlgmr.msra.gmra.mxu0 %vm4179_vm3, %v7250_v13  ;;  %4297 = vadd.xlane.f32.xlu0 %v4296_v42  ;;  %v4320_v38 = vsel %vm4179_vm3, %v7250_v13, 0.0 }
 0x3bf   :  { %7261 = vpow2.f32 %v4282_v58  ;;  %7113 = vmatpush3.msra.mxu0 %v8172_v12  ;;  %7114 = vmatprep.mubr.msk.f32.mxu0 %vm7307_vm1, %v7306_v28 }
 0x3c0   :  { %7122 = vmatprep.subr.mxu0 %v7306_v28 }
 0x3c1   :  { %v7252_v10 = vpop.eup %7251 }
 0x3c2   :  { %v7254_v11 = vpop.eup %7253  ;;  %v4299_v0 = vsel %vm4179_vm3, %v7252_v10, 0.0  ;;  %4321 = vadd.xlane.f32.xlu0 %v4320_v38  ;;  %v160_v38 = vld [vmem:[%s8448_s5 + $0x10] sm:$0xff] }
 0x3c3   :  { %7110 = vmatmul.mubr.msk.f32.vlgmr.msra.gmra.mxu1 %vm4179_vm3, %v7254_v11  ;;  %4300 = vadd.xlane.f32.xlu1 %v4299_v0  ;;  %v4323_v1 = vsel %vm4179_vm3, %v7254_v11, 0.0 }
 0x3c4   :  { %7118 = vmatpush3.msra.mxu1 %v8174_v15  ;;  %7119 = vmatprep.mubr.msk.f32.mxu1 %vm7307_vm1, %v7306_v28 }
 0x3c5   :  { %7127 = vmatprep.subr.mxu1 %v7306_v28 }
 0x3c6   :  { %v7256_v12 = vpop.eup %7255 }
 0x3c7   :  { %v7258_v3 = vpop.eup %7257  ;;  %4324 = vadd.xlane.f32.xlu1 %v4323_v1  ;;  %v4302_v4 = vsel %vm4179_vm3, %v7256_v12, 0.0 }
 0x3c8   :  { %7115 = vmatmul.mubr.msk.f32.vlgmr.msra.gmra.mxu0 %vm4179_vm3, %v7258_v3  ;;  %4303 = vadd.xlane.f32.xlu0 %v4302_v4  ;;  %v4326_v45 = vsel %vm4179_vm3, %v7258_v3, 0.0 }
 0x3c9   :  { %7123 = vmatpush3.msra.mxu0 %v8144_v48  ;;  %7124 = vmatprep.mubr.msk.f32.mxu0 %vm7307_vm1, %v7306_v28 }
 0x3ca   :  { %7132 = vmatprep.subr.mxu0 %v7306_v28 }
 0x3cb   :  { %v7260_v15 = vpop.eup %7259 }
 0x3cc   :  { %v7262_v7 = vpop.eup %7261  ;;  %7125 = vmatmul.mubr.msk.f32.vlgmr.msra.gmra.mxu0 %vm4179_vm3, %v8236_v19  ;;  %v4305_v9 = vsel %vm4179_vm3, %v7260_v15, 0.0  ;;  %4327 = vadd.xlane.f32.xlu0 %v4326_v45 }
 0x3cd   :  { %7120 = vmatmul.mubr.msk.f32.vlgmr.msra.gmra.mxu1 %vm4179_vm3, %v7262_v7  ;;  %7133 = vmatpush3.msra.mxu0 %v8150_v53  ;;  %v4329_v48 = vsel %vm4179_vm3, %v7262_v7, 0.0  ;;  %v158_v53 = vld [vmem:[%s8448_s5] sm:$0xff]  ;;  %v163_v7 = vld [vmem:[%s8448_s5 + $0x28] sm:$0xff] }
 0x3ce   :  { %7128 = vmatpush3.msra.mxu1 %v8148_v51  ;;  %4306 = vadd.xlane.f32.xlu1 %v4305_v9  ;;  %v159_v51 = vld [vmem:[%s8448_s5 + $0x8] sm:$0xff] }
 0x3cf   :  { %7129 = vmatprep.mubr.msk.f32.mxu1 %vm7307_vm1, %v7306_v28  ;;  %7134 = vmatprep.mubr.msk.f32.mxu0 %vm7307_vm1, %v7306_v28 }
 0x3d0   :  { %7137 = vmatprep.subr.mxu1 %v7306_v28  ;;  %7142 = vmatprep.subr.mxu0 %v7306_v28 }
 0x3d1   :  { %7130 = vmatmul.mubr.msk.f32.vlgmr.msra.gmra.mxu1 %vm4179_vm3, %v8247_v50  ;;  %7135 = vmatmul.mubr.msk.f32.vlgmr.msra.gmra.mxu0 %vm4179_vm3, %v8259_v26 }
 0x3d2   :  { %7138 = vmatpush3.msra.mxu1 %v8152_v55  ;;  %7143 = vmatpush3.msra.mxu0 %v8154_v56 }
 0x3d3   :  { %4330 = vadd.xlane.f32.xlu1 %v4329_v48  ;;  %7139 = vmatprep.mubr.msk.f32.mxu1 %vm7307_vm1, %v7306_v28 }
 0x3d4   :  { %7144 = vmatprep.mubr.msk.f32.mxu0 %vm7307_vm1, %v7306_v28  ;;  %7147 = vmatprep.subr.mxu1 %v7306_v28 }
 0x3d5   :  { %7152 = vmatprep.subr.mxu0 %v7306_v28  ;;  %7140 = vmatmul.mubr.msk.f32.vlgmr.msra.gmra.mxu1 %vm4179_vm3, %v8272_v24 }
 0x3d6   :  { %7145 = vmatmul.mubr.msk.f32.vlgmr.msra.gmra.mxu0 %vm4179_vm3, %v7248_v30  ;;  %7148 = vmatpush3.msra.mxu1 %v8156_v59 }
 0x3d7   :  { %7153 = vmatpush3.msra.mxu0 %v8158_v61  ;;  %7149 = vmatprep.mubr.msk.f32.mxu1 %vm7307_vm1, %v7306_v28 }
 0x3d8   :  { %7154 = vmatprep.mubr.msk.f32.mxu0 %vm7307_vm1, %v7306_v28  ;;  %7157 = vmatprep.subr.mxu1 %v7306_v28 }
 0x3d9   :  { %7150 = vmatmul.mubr.msk.f32.vlgmr.msra.gmra.mxu1 %vm4179_vm3, %v7252_v10  ;;  %7162 = vmatprep.subr.mxu0 %v7306_v28 }
 0x3da   :  { %7155 = vmatmul.mubr.msk.f32.vlgmr.msra.gmra.mxu0 %vm4179_vm3, %v7256_v12  ;;  %7158 = vmatpush3.msra.mxu1 %v8160_v63 }
 0x3db   :  { %7159 = vmatprep.mubr.msk.f32.mxu1 %vm7307_vm1, %v7306_v28  ;;  %7166 = vmatprep.mubr.msk.f32.mxu0 %vm7307_vm1, %v7306_v28 }
 0x3dc   :  { %7169 = vmatprep.subr.mxu1 %v7306_v28  ;;  %7163 = vmatpush3.msra.mxu0 %v159_v51 }
 0x3dd   :  { %7160 = vmatmul.mubr.msk.f32.vlgmr.msra.gmra.mxu1 %vm4179_vm3, %v7260_v15  ;;  %7164 = vmatprep.subr.mxu0 %v7306_v28 }
 0x3de   :  { %7173 = vmatprep.mubr.msk.f32.mxu1 %vm7307_vm1, %v7306_v28  ;;  %7170 = vmatpush3.msra.mxu1 %v159_v51 }
 0x3df   :  { %7171 = vmatprep.subr.mxu1 %v7306_v28  ;;  %7165 = vmatpush3.msra.mxu0 %v158_v53 }
 0x3e0   :  { %7172 = vmatpush3.msra.mxu1 %v158_v53  ;;  %7176 = vmatprep.subr.mxu0 %v7306_v28 }
 0x3e1   :  { %7183 = vmatprep.subr.mxu1 %v7306_v28 }
 0x433   :  { %v4286_v55 = vpop.xlane.xlu0 %4285 }
 0x437   :  { %v4310_v59 = vpop.xlane.xlu0 %4309 }
 0x438   :  { %v4289_v56 = vpop.xlane.xlu1 %4288  ;;  %v4332_v5 = vadd.f32 %v4310_v59, %v4286_v55  ;;  %v162_v59 = vld [vmem:[%s8448_s5 + $0x20] sm:$0xff] }
 0x43a   :  { %7263 = vrcp.f32 %v4332_v5  ;;  %v164_v5 = vld [vmem:[%s8448_s5 + $0x30] sm:$0xff] }
 0x43c   :  { %v4313_v61 = vpop.xlane.xlu1 %4312 }
 0x43d   :  { %v4292_v63 = vpop.xlane.xlu0 %4291  ;;  %v4333_v31 = vadd.f32 %v4313_v61, %v4289_v56 }
 0x43f   :  { %7265 = vrcp.f32 %v4333_v31 }
 0x441   :  { %v4316_v49 = vpop.xlane.xlu0 %4315 }
 0x442   :  { %v4295_v16 = vpop.xlane.xlu1 %4294  ;;  %v4334_v34 = vadd.f32 %v4316_v49, %v4292_v63 }
 0x444   :  { %7267 = vrcp.f32 %v4334_v34 }
 0x446   :  { %v4319_v17 = vpop.xlane.xlu1 %4318 }
 0x447   :  { %v4298_v18 = vpop.xlane.xlu0 %4297  ;;  %v4335_v32 = vadd.f32 %v4319_v17, %v4295_v16  ;;  %v7264_v57 = vpop.eup %7263 }
 0x449   :  { %7269 = vrcp.f32 %v4335_v32 }
 0x44b   :  { %v4322_v29 = vpop.xlane.xlu0 %4321 }
 0x44c   :  { %v4301_v23 = vpop.xlane.xlu1 %4300  ;;  %v4336_v6 = vadd.f32 %v4322_v29, %v4298_v18  ;;  %v7266_v11 = vpop.eup %7265 }
 0x44e   :  { %7271 = vrcp.f32 %v4336_v6 }
 0x450   :  { %v4325_v33 = vpop.xlane.xlu1 %4324 }
 0x451   :  { %v4304_v36 = vpop.xlane.xlu0 %4303  ;;  %v4337_v43 = vadd.f32 %v4325_v33, %v4301_v23  ;;  %v7268_v1 = vpop.eup %7267 }
 0x453   :  { %7273 = vrcp.f32 %v4337_v43 }
 0x455   :  { %v4328_v24 = vpop.xlane.xlu0 %4327 }
 0x456   :  { %v4338_v46 = vadd.f32 %v4328_v24, %v4304_v36  ;;  %v7270_v53 = vpop.eup %7269 }
 0x457   :  { %v4307_v2 = vpop.xlane.xlu1 %4306 }
 0x458   :  { %7275 = vrcp.f32 %v4338_v46 }
 0x45b   :  { %v7272_v61 = vpop.eup %7271 }
 0x45c   :  { %v4331_v52 = vpop.xlane.xlu1 %4330 }
 0x45d   :  { %v4339_v13 = vadd.f32 %v4331_v52, %v4307_v2 }
 0x45f   :  { %7277 = vrcp.f32 %v4339_v13 }
 0x46a   :  { %v4417_v19 = vpop.f32.mrf.mxu0 }
 0x46c   :  { %v7086_v14 = vpop.f32.mrf.mxu0 }
 0x46f   :  { %v4490_v22 = vpop.f32.mrf.mxu1 }
 0x471   :  { %v7091_v25 = vpop.f32.mrf.mxu1 }
 0x472   :  { %v165_v25 = vld [vmem:[%s8448_s5 + $0x38] sm:$0xff] }
 0x474   :  { %v4563_v50 = vpop.f32.mrf.mxu0 }
 0x476   :  { %v7096_v20 = vpop.f32.mrf.mxu0 }
 0x479   :  { %v4636_v21 = vpop.f32.mrf.mxu1 }
 0x47b   :  { %v7101_v27 = vpop.f32.mrf.mxu1 }
 0x47e   :  { %v4709_v62 = vpop.f32.mrf.mxu0 }
 0x480   :  { %v7106_v26 = vpop.f32.mrf.mxu0 }
 0x483   :  { %v8364_v37 = vpop.f32.mrf.mxu1 }
 0x485   :  { %v7111_v39 = vpop.f32.mrf.mxu1 }
 0x488   :  { %v8366_v41 = vpop.f32.mrf.mxu0 }
 0x48a   :  { %v7116_v44 = vpop.f32.mrf.mxu0 }
 0x48c   :  { %v5001_v47 = vpop.f32.mrf.mxu0 }
 0x48d   :  { %v8368_v35 = vpop.f32.mrf.mxu1  ;;  %v5002_v8 = vadd.f32 %v5001_v47, %v4417_v19 }
 0x48e   :  { %v7126_v30 = vpop.f32.mrf.mxu0 }
 0x48f   :  { %v5516_v54 = vmul.f32 %v7264_v57, %v5002_v8  ;;  %v7121_v58 = vpop.f32.mrf.mxu1 }
 0x491   :  { %v5074_v42 = vpop.f32.mrf.mxu1  ;;  %v5147_v10 = vpop.f32.mrf.mxu0  ;;  %7167 = vmatmul.mubr.msk.f32.vlgmr.msra.gmra.mxu0 %vm2986_vm2, %v5516_v54 }
 0x492   :  { %v5075_v0 = vadd.f32 %v5074_v42, %v4490_v22  ;;  %v5148_v12 = vadd.f32 %v5147_v10, %v4563_v50  ;;  %7177 = vmatpush3.msra.mxu0 %v161_v60  ;;  %7180 = vmatprep.mubr.msk.f32.mxu0 %vm7307_vm1, %v7306_v28  ;;  %v7274_v50 = vpop.eup %7273 }
 0x493   :  { %v7131_v3 = vpop.f32.mrf.mxu1  ;;  %v7136_v4 = vpop.f32.mrf.mxu0  ;;  %7178 = vmatprep.subr.mxu0 %v7306_v28 }
 0x494   :  { %v5517_v15 = vmul.f32 %v7266_v11, %v5075_v0  ;;  %v5518_v45 = vmul.f32 %v7268_v1, %v5148_v12  ;;  %7179 = vmatpush3.msra.mxu0 %v160_v38  ;;  %v7276_v20 = vpop.eup %7275 }
 0x495   :  { %v5220_v9 = vpop.f32.mrf.mxu1  ;;  %7190 = vmatprep.subr.mxu0 %v7306_v28  ;;  %v7278_v31 = vpop.eup %7277 }
 0x496   :  { %v5221_v48 = vadd.f32 %v5220_v9, %v4636_v21  ;;  %v5293_v51 = vpop.f32.mrf.mxu0  ;;  %7174 = vmatmul.mubr.msk.f32.vlgmr.msra.gmra.mxu1 %vm2986_vm2, %v5517_v15  ;;  %7181 = vmatmul.mubr.msk.f32.vlgmr.msra.gmra.mxu0 %vm2986_vm2, %v5518_v45 }
 0x497   :  { %v5294_v55 = vadd.f32 %v5293_v51, %v4709_v62  ;;  %v7141_v56 = vpop.f32.mrf.mxu1  ;;  %7184 = vmatpush3.msra.mxu1 %v161_v60  ;;  %7191 = vmatpush3.msra.mxu0 %v163_v7 }
 0x498   :  { %v5519_v63 = vmul.f32 %v7270_v53, %v5221_v48  ;;  %v7146_v19 = vpop.f32.mrf.mxu0  ;;  %7185 = vmatprep.subr.mxu1 %v7306_v28  ;;  %7192 = vmatprep.subr.mxu0 %v7306_v28 }
 0x499   :  { %v5520_v14 = vmul.f32 %v7272_v61, %v5294_v55  ;;  %v5366_v16 = vpop.f32.mrf.mxu1  ;;  %7186 = vmatpush3.msra.mxu1 %v160_v38  ;;  %7187 = vmatprep.mubr.msk.f32.mxu1 %vm7307_vm1, %v7306_v28 }
 0x49a   :  { %v5367_v22 = vadd.f32 %v5366_v16, %v8364_v37  ;;  %v5439_v49 = vpop.f32.mrf.mxu0  ;;  %7193 = vmatpush3.msra.mxu0 %v162_v59  ;;  %7194 = vmatprep.mubr.msk.f32.mxu0 %vm7307_vm1, %v7306_v28 }
 0x49b   :  { %v5440_v17 = vadd.f32 %v5439_v49, %v8366_v41  ;;  %7188 = vmatmul.mubr.msk.f32.vlgmr.msra.gmra.mxu1 %vm2986_vm2, %v5519_v63  ;;  %7195 = vmatmul.mubr.msk.f32.vlgmr.msra.gmra.mxu0 %vm2986_vm2, %v5520_v14  ;;  %v7151_v18 = vpop.f32.mrf.mxu1  ;;  %v6150_v49 = vsub.s32 4, %v7405_v40 }
 0x49c   :  { %7197 = vmatprep.subr.mxu1 %v7306_v28  ;;  %7204 = vmatprep.subr.mxu0 %v7306_v28  ;;  %v7156_v21 = vpop.f32.mrf.mxu0  ;;  %v5521_v23 = vmul.f32 %v7274_v50, %v5367_v22  ;;  %v7283_v50 = vld [vmem:[%s8449_s6] sm:$0x3f] }
 0x49d   :  { %v5522_v27 = vmul.f32 %v7276_v20, %v5440_v17  ;;  %7198 = vmatpush3.msra.mxu1 %v163_v7  ;;  %7205 = vmatpush3.msra.mxu0 %v165_v25  ;;  %v5512_v29 = vpop.f32.mrf.mxu1  ;;  %v6151_v17 = vrot.slane %v7283_v50, %v6150_v49 }
 0x49e   :  { %7199 = vmatprep.subr.mxu1 %v7306_v28  ;;  %7206 = vmatprep.subr.mxu0 %v7306_v28  ;;  %v5513_v62 = vadd.f32 %v5512_v29, %v8368_v35 }
 0x49f   :  { %7200 = vmatpush3.msra.mxu1 %v162_v59  ;;  %7201 = vmatprep.mubr.msk.f32.mxu1 %vm7307_vm1, %v7306_v28  ;;  %v7161_v26 = vpop.f32.mrf.mxu1 }
 0x4a0   :  { %7207 = vmatpush3.msra.mxu0 %v164_v5  ;;  %7208 = vmatprep.mubr.msk.f32.mxu0 %vm7307_vm1, %v7306_v28  ;;  %v5523_v33 = vmul.f32 %v7278_v31, %v5513_v62 }
 0x4a1   :  { %7202 = vmatmul.mubr.msk.f32.vlgmr.msra.gmra.mxu1 %vm2986_vm2, %v5521_v23  ;;  %7209 = vmatmul.mubr.msk.f32.vlgmr.msra.gmra.mxu0 %vm2986_vm2, %v5522_v27 }
 0x4a2   :  { %7211 = vmatprep.subr.mxu1 %v7306_v28  ;;  %7215 = vmatprep.mubr.msk.f32.mxu1 %vm7307_vm1, %v7306_v28 }
 0x4a3   :  { %7212 = vmatpush3.msra.mxu1 %v165_v25  ;;  %v6156_v25 = vsub.s32 5, %v7405_v40 }
 0x4a4   :  { %7213 = vmatprep.subr.mxu1 %v7306_v28 }
 0x4a5   :  { %7214 = vmatpush3.msra.mxu1 %v164_v5  ;;  %v6157_v21 = vrot.slane %v7283_v50, %v6156_v25 }
 0x4a6   :  { %7216 = vmatmul.mubr.msk.f32.vlgmr.msra.gmra.mxu1 %vm2986_vm2, %v5523_v33 }
 0x551   :  { %v5593_v34 = vpop.f32.mrf.mxu0 }
 0x552   :  { %v6108_v46 = vsel %vm32_vm0, %v5593_v34, 0.0 }
 0x553   :  { %v7168_v36 = vpop.f32.mrf.mxu0 }
 0x556   :  { %v5666_v37 = vpop.f32.mrf.mxu1  ;;  %v5739_v39 = vpop.f32.mrf.mxu0 }
 0x557   :  { %v6109_v41 = vsel %vm32_vm0, %v5739_v39, 0.0  ;;  %v6115_v54 = vsel %vm32_vm0, %v5666_v37, 0.0 }
 0x558   :  { %v7175_v32 = vpop.f32.mrf.mxu1  ;;  %v7182_v6 = vpop.f32.mrf.mxu0  ;;  %v6110_v28 = vadd.f32 %v6109_v41, %v6108_v46 }
 0x55b   :  { %v5812_v2 = vpop.f32.mrf.mxu1  ;;  %v5885_v24 = vpop.f32.mrf.mxu0 }
 0x55c   :  { %v6111_v47 = vsel %vm32_vm0, %v5885_v24, 0.0  ;;  %v6116_v52 = vsel %vm32_vm0, %v5812_v2, 0.0 }
 0x55d   :  { %v7189_v43 = vpop.f32.mrf.mxu1  ;;  %v7196_v44 = vpop.f32.mrf.mxu0  ;;  %v6112_v35 = vadd.f32 %v6111_v47, %v6110_v28  ;;  %v6117_v10 = vadd.f32 %v6116_v52, %v6115_v54 }
 0x561   :  { %v5958_v8 = vpop.f32.mrf.mxu1  ;;  %v6031_v57 = vpop.f32.mrf.mxu0 }
 0x562   :  { %v6113_v30 = vsel %vm32_vm0, %v6031_v57, 0.0  ;;  %v6118_v58 = vsel %vm32_vm0, %v5958_v8, 0.0 }
 0x563   :  { %v6114_v60 = vadd.f32 %v6113_v30, %v6112_v35  ;;  %v7203_v13 = vpop.f32.mrf.mxu1  ;;  %v7210_v42 = vpop.f32.mrf.mxu0  ;;  %v6119_v11 = vadd.f32 %v6118_v58, %v6117_v10 }
 0x565   :  { %v6122_v38 = vsel %vm32_vm0, %v6114_v60, 0.0 }
 0x566   :  { %v6104_v0 = vpop.f32.mrf.mxu1  ;;  %6123 = vadd.xlane.f32.xlu0 %v6122_v38 }
 0x567   :  { %v6120_v12 = vsel %vm32_vm0, %v6104_v0, 0.0 }
 0x568   :  { %v6121_v1 = vadd.f32 %v6120_v12, %v6119_v11  ;;  %v7217_v3 = vpop.f32.mrf.mxu1 }
 0x56a   :  { %v6125_v4 = vsel %vm32_vm0, %v6121_v1, 0.0 }
 0x56b   :  { %6126 = vadd.xlane.f32.xlu1 %v6125_v4 }
 0x5ef   :  { %v6124_v15 = vpop.xlane.xlu0 %6123 }
 0x5f0   :  { %v6128_v45 = vmul.f32 0.03125, %v6124_v15 }
 0x5f2   :  { %v6130_v7 = vsub.f32 %v6114_v60, %v6128_v45 }
 0x5f4   :  { %v6127_v9 = vpop.xlane.xlu1 %6126  ;;  %v6132_v48 = vmul.f32 %v6130_v7, %v6130_v7 }
 0x5f5   :  { %v6129_v51 = vmul.f32 0.03125, %v6127_v9 }
 0x5f6   :  { %v6134_v53 = vsel %vm32_vm0, %v6132_v48, 0.0 }
 0x5f7   :  { %v6131_v55 = vsub.f32 %v6121_v1, %v6129_v51  ;;  %6135 = vadd.xlane.f32.xlu0 %v6134_v53 }
 0x5f9   :  { %v6133_v56 = vmul.f32 %v6131_v55, %v6131_v55 }
 0x5fb   :  { %v6137_v59 = vsel %vm32_vm0, %v6133_v56, 0.0 }
 0x5fc   :  { %6138 = vadd.xlane.f32.xlu1 %v6137_v59 }
 0x680   :  { %v6136_v61 = vpop.xlane.xlu0 %6135 }
 0x681   :  { %v6140_v63 = vmul.f32 0.03125, %v6136_v61 }
 0x683   :  { %v6142_v19 = vadd.f32 1e-05, %v6140_v63 }
 0x685   :  { %7279 = vrsqrt.f32 %v6142_v19  ;;  %v6139_v14 = vpop.xlane.xlu1 %6138 }
 0x686   :  { %v6141_v16 = vmul.f32 0.03125, %v6139_v14 }
 0x688   :  { %v6143_v22 = vadd.f32 1e-05, %v6141_v16 }
 0x68a   :  { %7281 = vrsqrt.f32 %v6143_v22 }
 0x692   :  { %v7280_v18 = vpop.eup %7279 }
 0x693   :  { %v6146_v20 = vmul.f32 %v7280_v18, %v6130_v7 }
 0x695   :  { %v6152_v23 = vmul.f32 %v6151_v17, %v6146_v20 }
 0x697   :  { %v7282_v27 = vpop.eup %7281  ;;  %v6158_v29 = vadd.f32 %v6157_v21, %v6152_v23 }
 0x698   :  { %v6147_v5 = vmul.f32 %v7282_v27, %v6131_v55 }
 0x699   :  { %6160 = vst.msk [vmem:[#allocation2] sm:$0xff] %vm32_vm0, %v6158_v29 }
 0x69a   :  { %v6153_v62 = vmul.f32 %v6151_v17, %v6147_v5 }
 0x69c   :  { %v6159_v26 = vadd.f32 %v6157_v21, %v6153_v62 }
 0x69e   :  { %6161 = vst.msk [vmem:[#allocation2 + $0x8] sm:$0xff] %vm32_vm0, %v6159_v26 }
 0x69f   :  { %7295 = shalt.err (!%p7292_p4)
}
 0x6a0   :  { %s7309_s6 = smov 128   ;;  %s7310_s18 = smov 8  }
 0x6a1   :  { %6173 = dma.vmem_to_hbm [thread:$0]  %s6168_s17, 256, %s8450_s7, [#allocation3], %s7309_s6, %s7309_s6, %s7310_s18  }
 0x6a2   :  { %7304 = dma.done.wait [#allocation3], 256  }
 0x6a3   :  { %7305 = vsyncadd [#allocation3], 4294967040 }
 0x6a4   :  { %6177 = vsyncpa [#allocation3], 1 }

</bundles_post_ra>
